<compile_context>
chip_gen: v5e
topology: v5e:2x2
jax: 0.10.0
libtpu: 0.0.40
codegen_flags: <defaults>
</compile_context>

<pallas_src>
import math

import jax
import jax.numpy as jnp
from jax import lax
from jax.experimental import pallas as pl
from jax.experimental.pallas import tpu as pltpu

# ----------------------------- model dimensions -----------------------------
B = 2            # batch
S = 8            # sequence length
V = 64           # vocab size (synthetic)
H = 32           # bert hidden_size
NUM_HEADS = 2
HEAD_DIM = H // NUM_HEADS
FFN = 64         # intermediate size
HL = 16          # lstm_hidden_dim
FC_IN = 2 * HL   # bidirectional concat
FC_MID = FC_IN // 2
NTOK = B * S     # flattened tokens (s-major: row = s*B + b)

assert B & (B - 1) == 0, "batch-id mask below uses a power-of-two bitwise trick"

F32 = jnp.float32

# mat32 slab: 128-lane-aligned blocks, 32 rows each
M32_WIH, M32_WHH, M32_QKV, M32_WO, M32_W1, M32_FC1, M32_POS = (k * 128 for k in range(7))
# mat64 slab: 128-lane-aligned blocks, 64 rows each
M64_EMB, M64_W2 = 0, 128
# vec slab rows ([16,128], each vector zero-padded to 128 lanes)
(VR_LN0G, VR_LN0B, VR_BQKV, VR_BO, VR_LN1G, VR_LN1B, VR_B1, VR_B2,
 VR_LN2G, VR_LN2B, VR_LSTMB, VR_BNS, VR_BNSH, VR_FC1B, VR_FC2W, VR_FC2B) = range(16)


# =============================================================================
# Single fused kernel: embeddings + BERT encoder layer + BiLSTM + head.
# One invocation processes the whole (tiny) batch.
# =============================================================================
def fused_kernel(ids_ref, mask_ref, m32, m64, vec, out_ref):
    ids = ids_ref[...]                       # [NTOK, 1] int32, s-major
    mask_row = mask_ref[...]                 # [1, NTOK] f32 (1=valid, 0=pad), s-major

    # ------------------ embeddings: one-hot matmul gather + pos/tt ------------------
    vocab_iota = lax.broadcasted_iota(jnp.int32, (NTOK, V), 1)
    onehot = (ids == vocab_iota).astype(F32)                                   # [NTOK, V]
    tok = jnp.dot(onehot, m64[:, M64_EMB:M64_EMB + H],
                  preferred_element_type=F32)                                  # [NTOK, H]
    x = tok + m32[0:NTOK, M32_POS:M32_POS + H]      # pos + token_type(=0) table

    def layer_norm(z, grow, brow):
        mu = jnp.mean(z, axis=-1, keepdims=True)
        var = jnp.mean(jnp.square(z - mu), axis=-1, keepdims=True)
        return (z - mu) * lax.rsqrt(var + 1e-12) * grow + brow

    x = layer_norm(x, vec[VR_LN0G:VR_LN0G + 1, 0:H], vec[VR_LN0B:VR_LN0B + 1, 0:H])

    # attention bias: key-padding mask + block-diagonal "same batch" mask   [NTOK, NTOK]
    rb = lax.broadcasted_iota(jnp.int32, (NTOK, NTOK), 0) & (B - 1)
    cb = lax.broadcasted_iota(jnp.int32, (NTOK, NTOK), 1) & (B - 1)
    bias = jnp.where(rb == cb, 0.0, -1e9) + (mask_row - 1.0) * 1e9

    # ----------------------------- self-attention -----------------------------
    # fused QKV, padded to 128 output lanes (q 0:H | k H:2H | v 2H:3H | pad)
    qkv = jnp.dot(x, m32[:, M32_QKV:M32_QKV + 128],
                  preferred_element_type=F32) + vec[VR_BQKV:VR_BQKV + 1, :]    # [NTOK,128]
    scale = 1.0 / math.sqrt(HEAD_DIM)
    attn = vec[VR_BO:VR_BO + 1, 0:H]                 # start from bo, accumulate heads
    for nh in range(NUM_HEADS):                      # 2 heads, unrolled at trace time
        q_h = qkv[:, nh * HEAD_DIM:(nh + 1) * HEAD_DIM]
        k_h = qkv[:, H + nh * HEAD_DIM:H + (nh + 1) * HEAD_DIM]
        v_h = qkv[:, 2 * H + nh * HEAD_DIM:2 * H + (nh + 1) * HEAD_DIM]
        s = lax.dot_general(q_h, k_h, (((1,), (1,)), ((), ())),
                            preferred_element_type=F32)                       # [NTOK,NTOK]
        p = jax.nn.softmax(s * scale + bias, axis=-1)
        ctx = jnp.dot(p, v_h, preferred_element_type=F32)                     # [NTOK, D]
        # concat-over-heads folded into W_o row slices (no lane concat needed)
        attn = attn + jnp.dot(ctx, m32[nh * HEAD_DIM:(nh + 1) * HEAD_DIM, M32_WO:M32_WO + H],
                              preferred_element_type=F32)

    x = layer_norm(x + attn, vec[VR_LN1G:VR_LN1G + 1, 0:H], vec[VR_LN1B:VR_LN1B + 1, 0:H])

    # --------------------------------- FFN ---------------------------------
    # TODO(synk): HF BERT uses exact (erf) GELU; tanh approximation used here.
    hdn = jax.nn.gelu(jnp.dot(x, m32[:, M32_W1:M32_W1 + FFN],
                              preferred_element_type=F32) + vec[VR_B1:VR_B1 + 1, 0:FFN],
                      approximate=True)                                        # [NTOK, FFN]
    y = jnp.dot(hdn, m64[:, M64_W2:M64_W2 + H],
                preferred_element_type=F32) + vec[VR_B2:VR_B2 + 1, 0:H]
    x = layer_norm(x + y, vec[VR_LN2G:VR_LN2G + 1, 0:H], vec[VR_LN2B:VR_LN2B + 1, 0:H])

    # ---------------- bidirectional LSTM, directions merged, batched over B ----------------
    # packed gate lanes (8*HL = 128): [ i_f i_b | f_f f_b | o_f o_b | g_f g_b ]
    gx = jnp.dot(x, m32[:, M32_WIH:M32_WIH + 128],
                 preferred_element_type=F32) + vec[VR_LSTMB:VR_LSTMB + 1, :]   # [NTOK, 128]
    whh = m32[:, M32_WHH:M32_WHH + 128]                                        # [2HL, 8HL]
    col = lax.broadcasted_iota(jnp.int32, (1, 8 * HL), 1)
    fwd_lanes = (col % (2 * HL)) < HL

    h = jnp.zeros((B, 2 * HL), F32)                  # [h_fwd | h_bwd]
    c = jnp.zeros((B, 2 * HL), F32)
    for t in range(S):                               # fully unrolled fixed-trip recurrence
        g_f = gx[t * B:(t + 1) * B]                  # fwd direction reads timestep t
        g_b = gx[(S - 1 - t) * B:(S - t) * B]        # bwd direction reads timestep S-1-t
        g = jnp.where(fwd_lanes, g_f, g_b) + jnp.dot(h, whh, preferred_element_type=F32)
        sg = jax.nn.sigmoid(g[:, 0:6 * HL])          # one wide sigmoid over i|f|o
        gg = jnp.tanh(g[:, 6 * HL:8 * HL])           # one tanh over g
        i_g = sg[:, 0:2 * HL]
        f_g = sg[:, 2 * HL:4 * HL]
        o_g = sg[:, 4 * HL:6 * HL]
        c = f_g * c + i_g * gg
        h = o_g * jnp.tanh(c)
    # h == concat(hidden_forward, hidden_backward)   [B, 2*HL]

    # -------- head: dropout(identity) + folded BatchNorm(eval) + fc1 + relu + fc2(VPU) --------
    z = h * vec[VR_BNS:VR_BNS + 1, 0:FC_IN] + vec[VR_BNSH:VR_BNSH + 1, 0:FC_IN]
    z = jnp.maximum(jnp.dot(z, m32[:, M32_FC1:M32_FC1 + FC_MID],
                            preferred_element_type=F32) + vec[VR_FC1B:VR_FC1B + 1, 0:FC_MID],
                    0.0)                                                       # [B, FC_MID]
    # fc2 (N=1) as VPU multiply + lane reduce — keeps it off the MXU tail
    logits = jnp.sum(z * vec[VR_FC2W:VR_FC2W + 1, 0:FC_MID], axis=-1, keepdims=True)
    out_ref[...] = logits + vec[VR_FC2B:VR_FC2B + 1, 0:1]


# =============================================================================
# Wrapper
# =============================================================================
def forward(input_ids, attention_mask, fp):
    # only trivial [B,S]-sized reorders host-side; all real work is in the kernel
    ids_col = input_ids.T.reshape(NTOK, 1).astype(jnp.int32)       # s-major rows
    mask_row = attention_mask.astype(F32).T.reshape(1, NTOK)       # s-major lanes

    in_specs = [
        pl.BlockSpec((NTOK, 1), lambda i: (0, 0)),
        pl.BlockSpec((1, NTOK), lambda i: (0, 0)),
        pl.BlockSpec(fp["mat32"].shape, lambda i: (0, 0)),
        pl.BlockSpec(fp["mat64"].shape, lambda i: (0, 0)),
        pl.BlockSpec(fp["vec"].shape, lambda i: (0, 0)),
    ]
    return pl.pallas_call(
        fused_kernel,
        out_shape=jax.ShapeDtypeStruct((B, 1), F32),
        grid=(1,),                                    # single step: whole batch fused
        in_specs=in_specs,
        out_specs=pl.BlockSpec((B, 1), lambda i: (0, 0)),
        compiler_params=pltpu.CompilerParams(dimension_semantics=("arbitrary",)),
    )(ids_col, mask_row, fp["mat32"], fp["mat64"], fp["vec"])


# =============================================================================
# Deterministic parameter initialization + one-time host-side packing
# =============================================================================
def init_params(key):
    ks = iter(jax.random.split(key, 40))

    def normal(shape, std=0.02):
        return std * jax.random.normal(next(ks), shape, dtype=F32)

    def uniform_pm(shape, a):
        return jax.random.uniform(next(ks), shape, dtype=F32, minval=-a, maxval=a)

    def xavier(shape):  # (fan_in, fan_out)
        lim = math.sqrt(6.0 / (shape[0] + shape[1]))
        return jax.random.uniform(next(ks), shape, dtype=F32, minval=-lim, maxval=lim)

    p = {}
    # synthetic BERT
    p["word_emb"] = normal((V, H))
    p["pos_emb"] = normal((S, H))
    p["tt_emb"] = normal((2, H))
    p["ln0g"] = jnp.ones((1, H), F32); p["ln0b"] = jnp.zeros((1, H), F32)
    for name in ["wq", "wk", "wv", "wo"]:
        p[name] = normal((H, H))
    for name in ["bq", "bk", "bv", "bo"]:
        p[name] = jnp.zeros((1, H), F32)
    p["ln1g"] = jnp.ones((1, H), F32); p["ln1b"] = jnp.zeros((1, H), F32)
    p["w1"] = normal((H, FFN)); p["b1"] = jnp.zeros((1, FFN), F32)
    p["w2"] = normal((FFN, H)); p["b2"] = jnp.zeros((1, H), F32)
    p["ln2g"] = jnp.ones((1, H), F32); p["ln2b"] = jnp.zeros((1, H), F32)

    # LSTM (PyTorch default init U(-1/sqrt(HL), 1/sqrt(HL)); torch gate order i,f,g,o)
    klim = 1.0 / math.sqrt(HL)
    for d in ["f", "b"]:
        p[f"lstm_wih_{d}"] = uniform_pm((H, 4 * HL), klim)
        p[f"lstm_whh_{d}"] = uniform_pm((HL, 4 * HL), klim)
        bih = uniform_pm((1, 4 * HL), klim)
        bhh = uniform_pm((1, 4 * HL), klim)
        p[f"lstm_b_{d}"] = bih + bhh     # PyTorch adds both biases

    # BatchNorm1d (eval mode, default init)
    p["bn_g"] = jnp.ones((1, FC_IN), F32)
    p["bn_b"] = jnp.zeros((1, FC_IN), F32)
    p["bn_mean"] = jnp.zeros((1, FC_IN), F32)
    p["bn_var"] = jnp.ones((1, FC_IN), F32)

    # fc1 / fc2: xavier_uniform weights, zero bias (matches _init_weights)
    p["fc1_w"] = xavier((FC_IN, FC_MID)); p["fc1_b"] = jnp.zeros((1, FC_MID), F32)
    p["fc2_w"] = xavier((FC_MID, 1));     p["fc2_b"] = jnp.zeros((1, 1), F32)
    return p


def pack_params(p):
    """One-time host-side repacking into 3 lane-aligned slabs (pure reorder, no math change
    except the exact BatchNorm-eval scale/shift fold)."""
    # fused QKV
    wqkv = jnp.concatenate([p["wq"], p["wk"], p["wv"]], axis=1)          # [H, 3H]
    bqkv = jnp.concatenate([p["bq"], p["bk"], p["bv"]], axis=1)          # [1, 3H]

    def split_gates(w):   # torch gate order i, f, g, o along last axis
        return (w[..., 0 * HL:1 * HL], w[..., 1 * HL:2 * HL],
                w[..., 2 * HL:3 * HL], w[..., 3 * HL:4 * HL])

    def pack_cols(wf, wb):
        # packed column layout: [ i_f i_b | f_f f_b | o_f o_b | g_f g_b ]
        i_f, f_f, g_f, o_f = split_gates(wf)
        i_b, f_b, g_b, o_b = split_gates(wb)
        return jnp.concatenate([i_f, i_b, f_f, f_b, o_f, o_b, g_f, g_b], axis=-1)

    lstm_wih = pack_cols(p["lstm_wih_f"], p["lstm_wih_b"])               # [H, 8*HL]
    lstm_b = pack_cols(p["lstm_b_f"], p["lstm_b_b"])                     # [1, 8*HL]
    zero = jnp.zeros((HL, 4 * HL), F32)
    lstm_whh = jnp.concatenate(                                          # block-diagonal
        [pack_cols(p["lstm_whh_f"], zero),      # rows 0:HL   act on h_fwd
         pack_cols(zero, p["lstm_whh_b"])],     # rows HL:2HL act on h_bwd
        axis=0)                                                          # [2*HL, 8*HL]

    # fold BatchNorm1d (eval, eps=1e-5) into scale/shift
    bn_scale = p["bn_g"] * lax.rsqrt(p["bn_var"] + 1e-5)
    bn_shift = p["bn_b"] - p["bn_mean"] * bn_scale

    # positional + token_type(=0) table, replicated to s-major flat rows [B*S, H]
    pos_rep = jnp.repeat(p["pos_emb"] + p["tt_emb"][0:1], B, axis=0)

    def blk(w, rows):  # zero-pad to a [rows, 128] lane-aligned block
        return jnp.pad(w, ((0, rows - w.shape[0]), (0, 128 - w.shape[1])))

    mat32 = jnp.concatenate(
        [blk(lstm_wih, 32), blk(lstm_whh, 32), blk(wqkv, 32), blk(p["wo"], 32),
         blk(p["w1"], 32), blk(p["fc1_w"], 32), blk(pos_rep, 32)], axis=1)   # [32, 896]
    mat64 = jnp.concatenate([blk(p["word_emb"], 64), blk(p["w2"], 64)], axis=1)  # [64, 256]

    def vrow(v):
        return jnp.pad(v, ((0, 0), (0, 128 - v.shape[1])))

    vec = jnp.concatenate([vrow(t) for t in [
        p["ln0g"], p["ln0b"], bqkv, p["bo"], p["ln1g"], p["ln1b"],
        p["b1"], p["b2"], p["ln2g"], p["ln2b"], lstm_b,
        bn_scale, bn_shift, p["fc1_b"], p["fc2_w"].T, p["fc2_b"]]], axis=0)      # [16, 128]

    return {"mat32": mat32, "mat64": mat64, "vec": vec}


if __name__ == "__main__":
    key = jax.random.PRNGKey(0)
    pkey, dkey = jax.random.split(key)
    packed = pack_params(init_params(pkey))

    input_ids = jax.random.randint(dkey, (B, S), 0, V, dtype=jnp.int32)
    # second example is padded by 2 tokens
    lengths = jnp.array([S, S - 2], dtype=jnp.int32)
    attention_mask = (jnp.arange(S)[None, :] < lengths[:, None]).astype(F32)

    logits = jax.jit(forward)(input_ids, attention_mask, packed)
    logits = jax.block_until_ready(logits)
    assert logits.shape == (B, 1) and logits.dtype == F32
    print("KERNEL_OK")
</pallas_src>

<mosaic_0001>
module attributes {stable_mosaic.version = 11 : i64} {
  func.func @fused_kernel(%arg0: i32, %arg1: memref<16x1xi32, #tpu.memory_space<vmem>>, %arg2: memref<1x16xf32, #tpu.memory_space<vmem>>, %arg3: memref<32x896xf32, #tpu.memory_space<vmem>>, %arg4: memref<64x256xf32, #tpu.memory_space<vmem>>, %arg5: memref<16x128xf32, #tpu.memory_space<vmem>>, %arg6: memref<2x1xf32, #tpu.memory_space<vmem>>) attributes {dimension_semantics = [#tpu.dimension_semantics<arbitrary>], iteration_bounds = array<i64: 1>, scalar_prefetch = 0 : i64, scratch_operands = 0 : i64, tpu.core_type = #tpu.core_type<tc>, window_params = [{pipeline_mode = #tpu.pipeline_mode<synchronous>, transform_indices = @transform_0, window_bounds = array<i64: 16, 1>}, {pipeline_mode = #tpu.pipeline_mode<synchronous>, transform_indices = @transform_1, window_bounds = array<i64: 1, 16>}, {pipeline_mode = #tpu.pipeline_mode<synchronous>, transform_indices = @transform_2, window_bounds = array<i64: 32, 896>}, {pipeline_mode = #tpu.pipeline_mode<synchronous>, transform_indices = @transform_3, window_bounds = array<i64: 64, 256>}, {pipeline_mode = #tpu.pipeline_mode<synchronous>, transform_indices = @transform_4, window_bounds = array<i64: 16, 128>}, {pipeline_mode = #tpu.pipeline_mode<synchronous>, transform_indices = @transform_5, window_bounds = array<i64: 2, 1>}]} {
    %c0 = arith.constant 0 : index
    %c0_0 = arith.constant 0 : index
    %0 = vector.load %arg1[%c0, %c0_0] : memref<16x1xi32, #tpu.memory_space<vmem>>, vector<16x1xi32>
    %c0_1 = arith.constant 0 : index
    %c0_2 = arith.constant 0 : index
    %1 = vector.load %arg2[%c0_1, %c0_2] : memref<1x16xf32, #tpu.memory_space<vmem>>, vector<1x16xf32>
    %2 = tpu.iota {dimensions = array<i32: 1>} : vector<16x64xi32>
    %3 = vector.broadcast %0 : vector<16x1xi32> to vector<16x64xi32>
    %4 = arith.cmpi eq, %3, %2 : vector<16x64xi32>
    %5 = arith.extui %4 : vector<16x64xi1> to vector<16x64xi32>
    %6 = arith.sitofp %5 : vector<16x64xi32> to vector<16x64xf32>
    %c0_3 = arith.constant 0 : index
    %c0_4 = arith.constant 0 : index
    %7 = vector.load %arg4[%c0_3, %c0_4] : memref<64x256xf32, #tpu.memory_space<vmem>>, vector<64x32xf32>
    %cst = arith.constant dense<0.000000e+00> : vector<16x32xf32>
    %8 = tpu.matmul %6, %7, %cst {dimension_numbers = #tpu.dot_dimension_numbers<[1], [0], [0], [1], [0, 0, 1, 1], [], []>} : vector<16x64xf32>, vector<64x32xf32>, vector<16x32xf32> -> vector<16x32xf32>
    %c0_5 = arith.constant 0 : index
    %c768 = arith.constant 768 : index
    %9 = vector.load %arg3[%c0_5, %c768] : memref<32x896xf32, #tpu.memory_space<vmem>>, vector<16x32xf32>
    %10 = arith.addf %8, %9 : vector<16x32xf32>
    %c0_6 = arith.constant 0 : index
    %c0_7 = arith.constant 0 : index
    %11 = vector.load %arg5[%c0_6, %c0_7] : memref<16x128xf32, #tpu.memory_space<vmem>>, vector<1x32xf32>
    %c1 = arith.constant 1 : index
    %c0_8 = arith.constant 0 : index
    %12 = vector.load %arg5[%c1, %c0_8] : memref<16x128xf32, #tpu.memory_space<vmem>>, vector<1x32xf32>
    %cst_9 = arith.constant dense<0.000000e+00> : vector<16xf32>
    %13 = vector.multi_reduction <add>, %10, %cst_9 [1] : vector<16x32xf32> to vector<16xf32>
    %14 = vector.shape_cast %13 : vector<16xf32> to vector<16x1xf32>
    %cst_10 = arith.constant 3.200000e+01 : f32
    %15 = vector.broadcast %cst_10 : f32 to vector<16x1xf32>
    %16 = arith.divf %14, %15 : vector<16x1xf32>
    %17 = vector.broadcast %16 : vector<16x1xf32> to vector<16x32xf32>
    %18 = arith.subf %10, %17 : vector<16x32xf32>
    %19 = arith.mulf %18, %18 : vector<16x32xf32>
    %cst_11 = arith.constant dense<0.000000e+00> : vector<16xf32>
    %20 = vector.multi_reduction <add>, %19, %cst_11 [1] : vector<16x32xf32> to vector<16xf32>
    %21 = vector.shape_cast %20 : vector<16xf32> to vector<16x1xf32>
    %cst_12 = arith.constant 3.200000e+01 : f32
    %22 = vector.broadcast %cst_12 : f32 to vector<16x1xf32>
    %23 = arith.divf %21, %22 : vector<16x1xf32>
    %24 = vector.broadcast %16 : vector<16x1xf32> to vector<16x32xf32>
    %25 = arith.subf %10, %24 : vector<16x32xf32>
    %cst_13 = arith.constant 9.99999996E-13 : f32
    %26 = vector.broadcast %cst_13 : f32 to vector<16x1xf32>
    %27 = arith.addf %23, %26 : vector<16x1xf32>
    %28 = math.rsqrt %27 : vector<16x1xf32>
    %29 = vector.broadcast %28 : vector<16x1xf32> to vector<16x32xf32>
    %30 = arith.mulf %25, %29 : vector<16x32xf32>
    %31 = vector.broadcast %11 : vector<1x32xf32> to vector<16x32xf32>
    %32 = arith.mulf %30, %31 : vector<16x32xf32>
    %33 = vector.broadcast %12 : vector<1x32xf32> to vector<16x32xf32>
    %34 = arith.addf %32, %33 : vector<16x32xf32>
    %35 = tpu.iota {dimensions = array<i32: 0>} : vector<16x16xi32>
    %c1_i32 = arith.constant 1 : i32
    %36 = vector.broadcast %c1_i32 : i32 to vector<16x16xi32>
    %37 = arith.andi %35, %36 : vector<16x16xi32>
    %38 = tpu.iota {dimensions = array<i32: 1>} : vector<16x16xi32>
    %c1_i32_14 = arith.constant 1 : i32
    %39 = vector.broadcast %c1_i32_14 : i32 to vector<16x16xi32>
    %40 = arith.andi %38, %39 : vector<16x16xi32>
    %41 = arith.cmpi eq, %37, %40 : vector<16x16xi32>
    %cst_15 = arith.constant 0.000000e+00 : f32
    %cst_16 = arith.constant -1.000000e+09 : f32
    %42 = vector.broadcast %cst_15 : f32 to vector<16x16xf32>
    %43 = vector.broadcast %cst_16 : f32 to vector<16x16xf32>
    %44 = arith.select %41, %42, %43 : vector<16x16xi1>, vector<16x16xf32>
    %cst_17 = arith.constant 1.000000e+00 : f32
    %45 = vector.broadcast %cst_17 : f32 to vector<1x16xf32>
    %46 = arith.subf %1, %45 : vector<1x16xf32>
    %cst_18 = arith.constant 1.000000e+09 : f32
    %47 = vector.broadcast %cst_18 : f32 to vector<1x16xf32>
    %48 = arith.mulf %46, %47 : vector<1x16xf32>
    %49 = vector.broadcast %48 : vector<1x16xf32> to vector<16x16xf32>
    %50 = arith.addf %44, %49 : vector<16x16xf32>
    %c0_19 = arith.constant 0 : index
    %c256 = arith.constant 256 : index
    %51 = vector.load %arg3[%c0_19, %c256] : memref<32x896xf32, #tpu.memory_space<vmem>>, vector<32x128xf32>
    %cst_20 = arith.constant dense<0.000000e+00> : vector<16x128xf32>
    %52 = tpu.matmul %34, %51, %cst_20 {dimension_numbers = #tpu.dot_dimension_numbers<[1], [0], [0], [1], [0, 0, 1, 1], [], []>} : vector<16x32xf32>, vector<32x128xf32>, vector<16x128xf32> -> vector<16x128xf32>
    %c2 = arith.constant 2 : index
    %c0_21 = arith.constant 0 : index
    %53 = vector.load %arg5[%c2, %c0_21] : memref<16x128xf32, #tpu.memory_space<vmem>>, vector<1x128xf32>
    %54 = vector.broadcast %53 : vector<1x128xf32> to vector<16x128xf32>
    %55 = arith.addf %52, %54 : vector<16x128xf32>
    %c3 = arith.constant 3 : index
    %c0_22 = arith.constant 0 : index
    %56 = vector.load %arg5[%c3, %c0_22] : memref<16x128xf32, #tpu.memory_space<vmem>>, vector<1x32xf32>
    %57 = vector.extract_strided_slice %55 {offsets = [0, 0], sizes = [16, 16], strides = [1, 1]} : vector<16x128xf32> to vector<16x16xf32>
    %58 = vector.extract_strided_slice %55 {offsets = [0, 32], sizes = [16, 16], strides = [1, 1]} : vector<16x128xf32> to vector<16x16xf32>
    %59 = vector.extract_strided_slice %55 {offsets = [0, 64], sizes = [16, 16], strides = [1, 1]} : vector<16x128xf32> to vector<16x16xf32>
    %cst_23 = arith.constant dense<0.000000e+00> : vector<16x16xf32>
    %60 = tpu.matmul %57, %58, %cst_23 {dimension_numbers = #tpu.dot_dimension_numbers<[1], [1], [0], [0], [0, 0, 1, 0], [], []>} : vector<16x16xf32>, vector<16x16xf32>, vector<16x16xf32> -> vector<16x16xf32>
    %cst_24 = arith.constant 2.500000e-01 : f32
    %61 = vector.broadcast %cst_24 : f32 to vector<16x16xf32>
    %62 = arith.mulf %60, %61 : vector<16x16xf32>
    %63 = arith.addf %62, %50 : vector<16x16xf32>
    %cst_25 = arith.constant dense<0xFF800000> : vector<16xf32>
    %64 = vector.multi_reduction <maximumf>, %63, %cst_25 [1] : vector<16x16xf32> to vector<16xf32>
    %cst_26 = arith.constant 0xFF800000 : f32
    %65 = vector.broadcast %cst_26 : f32 to vector<16xf32>
    %66 = arith.maximumf %65, %64 : vector<16xf32>
    %67 = vector.shape_cast %66 : vector<16xf32> to vector<16x1xf32>
    %68 = vector.broadcast %67 : vector<16x1xf32> to vector<16x16xf32>
    %69 = arith.subf %63, %68 : vector<16x16xf32>
    %70 = math.exp %69 : vector<16x16xf32>
    %cst_27 = arith.constant dense<0.000000e+00> : vector<16xf32>
    %71 = vector.multi_reduction <add>, %70, %cst_27 [1] : vector<16x16xf32> to vector<16xf32>
    %72 = vector.shape_cast %71 : vector<16xf32> to vector<16x1xf32>
    %73 = vector.broadcast %72 : vector<16x1xf32> to vector<16x16xf32>
    %74 = arith.divf %70, %73 : vector<16x16xf32>
    %cst_28 = arith.constant dense<0.000000e+00> : vector<16x16xf32>
    %75 = tpu.matmul %74, %59, %cst_28 {dimension_numbers = #tpu.dot_dimension_numbers<[1], [0], [0], [1], [0, 0, 1, 1], [], []>} : vector<16x16xf32>, vector<16x16xf32>, vector<16x16xf32> -> vector<16x16xf32>
    %c0_29 = arith.constant 0 : index
    %c384 = arith.constant 384 : index
    %76 = vector.load %arg3[%c0_29, %c384] : memref<32x896xf32, #tpu.memory_space<vmem>>, vector<16x32xf32>
    %cst_30 = arith.constant dense<0.000000e+00> : vector<16x32xf32>
    %77 = tpu.matmul %75, %76, %cst_30 {dimension_numbers = #tpu.dot_dimension_numbers<[1], [0], [0], [1], [0, 0, 1, 1], [], []>} : vector<16x16xf32>, vector<16x32xf32>, vector<16x32xf32> -> vector<16x32xf32>
    %78 = vector.broadcast %56 : vector<1x32xf32> to vector<16x32xf32>
    %79 = arith.addf %78, %77 : vector<16x32xf32>
    %80 = vector.extract_strided_slice %55 {offsets = [0, 16], sizes = [16, 16], strides = [1, 1]} : vector<16x128xf32> to vector<16x16xf32>
    %81 = vector.extract_strided_slice %55 {offsets = [0, 48], sizes = [16, 16], strides = [1, 1]} : vector<16x128xf32> to vector<16x16xf32>
    %82 = vector.extract_strided_slice %55 {offsets = [0, 80], sizes = [16, 16], strides = [1, 1]} : vector<16x128xf32> to vector<16x16xf32>
    %cst_31 = arith.constant dense<0.000000e+00> : vector<16x16xf32>
    %83 = tpu.matmul %80, %81, %cst_31 {dimension_numbers = #tpu.dot_dimension_numbers<[1], [1], [0], [0], [0, 0, 1, 0], [], []>} : vector<16x16xf32>, vector<16x16xf32>, vector<16x16xf32> -> vector<16x16xf32>
    %cst_32 = arith.constant 2.500000e-01 : f32
    %84 = vector.broadcast %cst_32 : f32 to vector<16x16xf32>
    %85 = arith.mulf %83, %84 : vector<16x16xf32>
    %86 = arith.addf %85, %50 : vector<16x16xf32>
    %cst_33 = arith.constant dense<0xFF800000> : vector<16xf32>
    %87 = vector.multi_reduction <maximumf>, %86, %cst_33 [1] : vector<16x16xf32> to vector<16xf32>
    %cst_34 = arith.constant 0xFF800000 : f32
    %88 = vector.broadcast %cst_34 : f32 to vector<16xf32>
    %89 = arith.maximumf %88, %87 : vector<16xf32>
    %90 = vector.shape_cast %89 : vector<16xf32> to vector<16x1xf32>
    %91 = vector.broadcast %90 : vector<16x1xf32> to vector<16x16xf32>
    %92 = arith.subf %86, %91 : vector<16x16xf32>
    %93 = math.exp %92 : vector<16x16xf32>
    %cst_35 = arith.constant dense<0.000000e+00> : vector<16xf32>
    %94 = vector.multi_reduction <add>, %93, %cst_35 [1] : vector<16x16xf32> to vector<16xf32>
    %95 = vector.shape_cast %94 : vector<16xf32> to vector<16x1xf32>
    %96 = vector.broadcast %95 : vector<16x1xf32> to vector<16x16xf32>
    %97 = arith.divf %93, %96 : vector<16x16xf32>
    %cst_36 = arith.constant dense<0.000000e+00> : vector<16x16xf32>
    %98 = tpu.matmul %97, %82, %cst_36 {dimension_numbers = #tpu.dot_dimension_numbers<[1], [0], [0], [1], [0, 0, 1, 1], [], []>} : vector<16x16xf32>, vector<16x16xf32>, vector<16x16xf32> -> vector<16x16xf32>
    %c16 = arith.constant 16 : index
    %c384_37 = arith.constant 384 : index
    %99 = vector.load %arg3[%c16, %c384_37] : memref<32x896xf32, #tpu.memory_space<vmem>>, vector<16x32xf32>
    %cst_38 = arith.constant dense<0.000000e+00> : vector<16x32xf32>
    %100 = tpu.matmul %98, %99, %cst_38 {dimension_numbers = #tpu.dot_dimension_numbers<[1], [0], [0], [1], [0, 0, 1, 1], [], []>} : vector<16x16xf32>, vector<16x32xf32>, vector<16x32xf32> -> vector<16x32xf32>
    %101 = arith.addf %79, %100 : vector<16x32xf32>
    %102 = arith.addf %34, %101 : vector<16x32xf32>
    %c4 = arith.constant 4 : index
    %c0_39 = arith.constant 0 : index
    %103 = vector.load %arg5[%c4, %c0_39] : memref<16x128xf32, #tpu.memory_space<vmem>>, vector<1x32xf32>
    %c5 = arith.constant 5 : index
    %c0_40 = arith.constant 0 : index
    %104 = vector.load %arg5[%c5, %c0_40] : memref<16x128xf32, #tpu.memory_space<vmem>>, vector<1x32xf32>
    %cst_41 = arith.constant dense<0.000000e+00> : vector<16xf32>
    %105 = vector.multi_reduction <add>, %102, %cst_41 [1] : vector<16x32xf32> to vector<16xf32>
    %106 = vector.shape_cast %105 : vector<16xf32> to vector<16x1xf32>
    %cst_42 = arith.constant 3.200000e+01 : f32
    %107 = vector.broadcast %cst_42 : f32 to vector<16x1xf32>
    %108 = arith.divf %106, %107 : vector<16x1xf32>
    %109 = vector.broadcast %108 : vector<16x1xf32> to vector<16x32xf32>
    %110 = arith.subf %102, %109 : vector<16x32xf32>
    %111 = arith.mulf %110, %110 : vector<16x32xf32>
    %cst_43 = arith.constant dense<0.000000e+00> : vector<16xf32>
    %112 = vector.multi_reduction <add>, %111, %cst_43 [1] : vector<16x32xf32> to vector<16xf32>
    %113 = vector.shape_cast %112 : vector<16xf32> to vector<16x1xf32>
    %cst_44 = arith.constant 3.200000e+01 : f32
    %114 = vector.broadcast %cst_44 : f32 to vector<16x1xf32>
    %115 = arith.divf %113, %114 : vector<16x1xf32>
    %116 = vector.broadcast %108 : vector<16x1xf32> to vector<16x32xf32>
    %117 = arith.subf %102, %116 : vector<16x32xf32>
    %cst_45 = arith.constant 9.99999996E-13 : f32
    %118 = vector.broadcast %cst_45 : f32 to vector<16x1xf32>
    %119 = arith.addf %115, %118 : vector<16x1xf32>
    %120 = math.rsqrt %119 : vector<16x1xf32>
    %121 = vector.broadcast %120 : vector<16x1xf32> to vector<16x32xf32>
    %122 = arith.mulf %117, %121 : vector<16x32xf32>
    %123 = vector.broadcast %103 : vector<1x32xf32> to vector<16x32xf32>
    %124 = arith.mulf %122, %123 : vector<16x32xf32>
    %125 = vector.broadcast %104 : vector<1x32xf32> to vector<16x32xf32>
    %126 = arith.addf %124, %125 : vector<16x32xf32>
    %c0_46 = arith.constant 0 : index
    %c512 = arith.constant 512 : index
    %127 = vector.load %arg3[%c0_46, %c512] : memref<32x896xf32, #tpu.memory_space<vmem>>, vector<32x64xf32>
    %cst_47 = arith.constant dense<0.000000e+00> : vector<16x64xf32>
    %128 = tpu.matmul %126, %127, %cst_47 {dimension_numbers = #tpu.dot_dimension_numbers<[1], [0], [0], [1], [0, 0, 1, 1], [], []>} : vector<16x32xf32>, vector<32x64xf32>, vector<16x64xf32> -> vector<16x64xf32>
    %c6 = arith.constant 6 : index
    %c0_48 = arith.constant 0 : index
    %129 = vector.load %arg5[%c6, %c0_48] : memref<16x128xf32, #tpu.memory_space<vmem>>, vector<1x64xf32>
    %130 = vector.broadcast %129 : vector<1x64xf32> to vector<16x64xf32>
    %131 = arith.addf %128, %130 : vector<16x64xf32>
    %132 = arith.mulf %131, %131 : vector<16x64xf32>
    %133 = arith.mulf %131, %132 : vector<16x64xf32>
    %cst_49 = arith.constant 4.471500e-02 : f32
    %134 = vector.broadcast %cst_49 : f32 to vector<16x64xf32>
    %135 = arith.mulf %134, %133 : vector<16x64xf32>
    %136 = arith.addf %131, %135 : vector<16x64xf32>
    %cst_50 = arith.constant 0.797884583 : f32
    %137 = vector.broadcast %cst_50 : f32 to vector<16x64xf32>
    %138 = arith.mulf %137, %136 : vector<16x64xf32>
    %139 = math.tanh %138 : vector<16x64xf32>
    %cst_51 = arith.constant 1.000000e+00 : f32
    %140 = vector.broadcast %cst_51 : f32 to vector<16x64xf32>
    %141 = arith.addf %140, %139 : vector<16x64xf32>
    %cst_52 = arith.constant 5.000000e-01 : f32
    %142 = vector.broadcast %cst_52 : f32 to vector<16x64xf32>
    %143 = arith.mulf %142, %141 : vector<16x64xf32>
    %144 = arith.mulf %131, %143 : vector<16x64xf32>
    %c0_53 = arith.constant 0 : index
    %c128 = arith.constant 128 : index
    %145 = vector.load %arg4[%c0_53, %c128] : memref<64x256xf32, #tpu.memory_space<vmem>>, vector<64x32xf32>
    %cst_54 = arith.constant dense<0.000000e+00> : vector<16x32xf32>
    %146 = tpu.matmul %144, %145, %cst_54 {dimension_numbers = #tpu.dot_dimension_numbers<[1], [0], [0], [1], [0, 0, 1, 1], [], []>} : vector<16x64xf32>, vector<64x32xf32>, vector<16x32xf32> -> vector<16x32xf32>
    %c7 = arith.constant 7 : index
    %c0_55 = arith.constant 0 : index
    %147 = vector.load %arg5[%c7, %c0_55] : memref<16x128xf32, #tpu.memory_space<vmem>>, vector<1x32xf32>
    %148 = vector.broadcast %147 : vector<1x32xf32> to vector<16x32xf32>
    %149 = arith.addf %146, %148 : vector<16x32xf32>
    %150 = arith.addf %126, %149 : vector<16x32xf32>
    %c8 = arith.constant 8 : index
    %c0_56 = arith.constant 0 : index
    %151 = vector.load %arg5[%c8, %c0_56] : memref<16x128xf32, #tpu.memory_space<vmem>>, vector<1x32xf32>
    %c9 = arith.constant 9 : index
    %c0_57 = arith.constant 0 : index
    %152 = vector.load %arg5[%c9, %c0_57] : memref<16x128xf32, #tpu.memory_space<vmem>>, vector<1x32xf32>
    %cst_58 = arith.constant dense<0.000000e+00> : vector<16xf32>
    %153 = vector.multi_reduction <add>, %150, %cst_58 [1] : vector<16x32xf32> to vector<16xf32>
    %154 = vector.shape_cast %153 : vector<16xf32> to vector<16x1xf32>
    %cst_59 = arith.constant 3.200000e+01 : f32
    %155 = vector.broadcast %cst_59 : f32 to vector<16x1xf32>
    %156 = arith.divf %154, %155 : vector<16x1xf32>
    %157 = vector.broadcast %156 : vector<16x1xf32> to vector<16x32xf32>
    %158 = arith.subf %150, %157 : vector<16x32xf32>
    %159 = arith.mulf %158, %158 : vector<16x32xf32>
    %cst_60 = arith.constant dense<0.000000e+00> : vector<16xf32>
    %160 = vector.multi_reduction <add>, %159, %cst_60 [1] : vector<16x32xf32> to vector<16xf32>
    %161 = vector.shape_cast %160 : vector<16xf32> to vector<16x1xf32>
    %cst_61 = arith.constant 3.200000e+01 : f32
    %162 = vector.broadcast %cst_61 : f32 to vector<16x1xf32>
    %163 = arith.divf %161, %162 : vector<16x1xf32>
    %164 = vector.broadcast %156 : vector<16x1xf32> to vector<16x32xf32>
    %165 = arith.subf %150, %164 : vector<16x32xf32>
    %cst_62 = arith.constant 9.99999996E-13 : f32
    %166 = vector.broadcast %cst_62 : f32 to vector<16x1xf32>
    %167 = arith.addf %163, %166 : vector<16x1xf32>
    %168 = math.rsqrt %167 : vector<16x1xf32>
    %169 = vector.broadcast %168 : vector<16x1xf32> to vector<16x32xf32>
    %170 = arith.mulf %165, %169 : vector<16x32xf32>
    %171 = vector.broadcast %151 : vector<1x32xf32> to vector<16x32xf32>
    %172 = arith.mulf %170, %171 : vector<16x32xf32>
    %173 = vector.broadcast %152 : vector<1x32xf32> to vector<16x32xf32>
    %174 = arith.addf %172, %173 : vector<16x32xf32>
    %c0_63 = arith.constant 0 : index
    %c0_64 = arith.constant 0 : index
    %175 = vector.load %arg3[%c0_63, %c0_64] : memref<32x896xf32, #tpu.memory_space<vmem>>, vector<32x128xf32>
    %cst_65 = arith.constant dense<0.000000e+00> : vector<16x128xf32>
    %176 = tpu.matmul %174, %175, %cst_65 {dimension_numbers = #tpu.dot_dimension_numbers<[1], [0], [0], [1], [0, 0, 1, 1], [], []>} : vector<16x32xf32>, vector<32x128xf32>, vector<16x128xf32> -> vector<16x128xf32>
    %c10 = arith.constant 10 : index
    %c0_66 = arith.constant 0 : index
    %177 = vector.load %arg5[%c10, %c0_66] : memref<16x128xf32, #tpu.memory_space<vmem>>, vector<1x128xf32>
    %178 = vector.broadcast %177 : vector<1x128xf32> to vector<16x128xf32>
    %179 = arith.addf %176, %178 : vector<16x128xf32>
    %c0_67 = arith.constant 0 : index
    %c128_68 = arith.constant 128 : index
    %180 = vector.load %arg3[%c0_67, %c128_68] : memref<32x896xf32, #tpu.memory_space<vmem>>, vector<32x128xf32>
    %181 = tpu.iota {dimensions = array<i32: 1>} : vector<1x128xi32>
    %c32_i32 = arith.constant 32 : i32
    %c0_i32 = arith.constant 0 : i32
    %182 = arith.cmpi eq, %c32_i32, %c0_i32 : i32
    %c1_i32_69 = arith.constant 1 : i32
    %183 = arith.select %182, %c1_i32_69, %c32_i32 : i32
    %184 = vector.broadcast %183 : i32 to vector<1x128xi32>
    %185 = arith.remsi %181, %184 : vector<1x128xi32>
    %c0_i32_70 = arith.constant 0 : i32
    %186 = vector.broadcast %c0_i32_70 : i32 to vector<1x128xi32>
    %187 = arith.cmpi ne, %185, %186 : vector<1x128xi32>
    %c0_i32_71 = arith.constant 0 : i32
    %188 = vector.broadcast %c0_i32_71 : i32 to vector<1x128xi32>
    %189 = arith.cmpi slt, %185, %188 : vector<1x128xi32>
    %c0_i32_72 = arith.constant 0 : i32
    %190 = arith.cmpi slt, %183, %c0_i32_72 : i32
    %191 = vector.broadcast %190 : i1 to vector<1x128xi1>
    %192 = vector.broadcast %191 : vector<1x128xi1> to vector<1x128xi1>
    %193 = arith.xori %189, %192 : vector<1x128xi1>
    %194 = arith.andi %193, %187 : vector<1x128xi1>
    %195 = vector.broadcast %183 : i32 to vector<1x128xi32>
    %196 = arith.addi %185, %195 : vector<1x128xi32>
    %197 = arith.select %194, %196, %185 : vector<1x128xi1>, vector<1x128xi32>
    %c16_i32 = arith.constant 16 : i32
    %198 = vector.broadcast %c16_i32 : i32 to vector<1x128xi32>
    %199 = arith.cmpi slt, %197, %198 : vector<1x128xi32>
    %cst_73 = arith.constant 0.000000e+00 : f32
    %200 = vector.broadcast %cst_73 : f32 to vector<2x32xf32>
    %cst_74 = arith.constant 0.000000e+00 : f32
    %201 = vector.broadcast %cst_74 : f32 to vector<2x32xf32>
    %202 = vector.extract_strided_slice %179 {offsets = [0, 0], sizes = [2, 128], strides = [1, 1]} : vector<16x128xf32> to vector<2x128xf32>
    %203 = vector.extract_strided_slice %179 {offsets = [14, 0], sizes = [2, 128], strides = [1, 1]} : vector<16x128xf32> to vector<2x128xf32>
    %204 = vector.shape_cast %199 : vector<1x128xi1> to vector<1x128xi1>
    %205 = vector.broadcast %204 : vector<1x128xi1> to vector<2x128xi1>
    %206 = arith.select %205, %202, %203 : vector<2x128xi1>, vector<2x128xf32>
    %cst_75 = arith.constant dense<0.000000e+00> : vector<2x128xf32>
    %207 = tpu.matmul %200, %180, %cst_75 {dimension_numbers = #tpu.dot_dimension_numbers<[1], [0], [0], [1], [0, 0, 1, 1], [], []>} : vector<2x32xf32>, vector<32x128xf32>, vector<2x128xf32> -> vector<2x128xf32>
    %208 = arith.addf %206, %207 : vector<2x128xf32>
    %209 = vector.extract_strided_slice %208 {offsets = [0, 0], sizes = [2, 96], strides = [1, 1]} : vector<2x128xf32> to vector<2x96xf32>
    %210 = arith.negf %209 : vector<2x96xf32>
    %211 = math.exp %210 : vector<2x96xf32>
    %cst_76 = arith.constant 1.000000e+00 : f32
    %212 = vector.broadcast %cst_76 : f32 to vector<2x96xf32>
    %213 = arith.addf %212, %211 : vector<2x96xf32>
    %214 = arith.divf %212, %213 : vector<2x96xf32>
    %215 = vector.extract_strided_slice %208 {offsets = [0, 96], sizes = [2, 32], strides = [1, 1]} : vector<2x128xf32> to vector<2x32xf32>
    %216 = math.tanh %215 : vector<2x32xf32>
    %217 = vector.extract_strided_slice %214 {offsets = [0, 0], sizes = [2, 32], strides = [1, 1]} : vector<2x96xf32> to vector<2x32xf32>
    %218 = vector.extract_strided_slice %214 {offsets = [0, 32], sizes = [2, 32], strides = [1, 1]} : vector<2x96xf32> to vector<2x32xf32>
    %219 = vector.extract_strided_slice %214 {offsets = [0, 64], sizes = [2, 32], strides = [1, 1]} : vector<2x96xf32> to vector<2x32xf32>
    %220 = arith.mulf %218, %201 : vector<2x32xf32>
    %221 = arith.mulf %217, %216 : vector<2x32xf32>
    %222 = arith.addf %220, %221 : vector<2x32xf32>
    %223 = math.tanh %222 : vector<2x32xf32>
    %224 = arith.mulf %219, %223 : vector<2x32xf32>
    %225 = vector.extract_strided_slice %179 {offsets = [2, 0], sizes = [2, 128], strides = [1, 1]} : vector<16x128xf32> to vector<2x128xf32>
    %226 = vector.extract_strided_slice %179 {offsets = [12, 0], sizes = [2, 128], strides = [1, 1]} : vector<16x128xf32> to vector<2x128xf32>
    %227 = vector.shape_cast %199 : vector<1x128xi1> to vector<1x128xi1>
    %228 = vector.broadcast %227 : vector<1x128xi1> to vector<2x128xi1>
    %229 = arith.select %228, %225, %226 : vector<2x128xi1>, vector<2x128xf32>
    %cst_77 = arith.constant dense<0.000000e+00> : vector<2x128xf32>
    %230 = tpu.matmul %224, %180, %cst_77 {dimension_numbers = #tpu.dot_dimension_numbers<[1], [0], [0], [1], [0, 0, 1, 1], [], []>} : vector<2x32xf32>, vector<32x128xf32>, vector<2x128xf32> -> vector<2x128xf32>
    %231 = arith.addf %229, %230 : vector<2x128xf32>
    %232 = vector.extract_strided_slice %231 {offsets = [0, 0], sizes = [2, 96], strides = [1, 1]} : vector<2x128xf32> to vector<2x96xf32>
    %233 = arith.negf %232 : vector<2x96xf32>
    %234 = math.exp %233 : vector<2x96xf32>
    %cst_78 = arith.constant 1.000000e+00 : f32
    %235 = vector.broadcast %cst_78 : f32 to vector<2x96xf32>
    %236 = arith.addf %235, %234 : vector<2x96xf32>
    %237 = arith.divf %235, %236 : vector<2x96xf32>
    %238 = vector.extract_strided_slice %231 {offsets = [0, 96], sizes = [2, 32], strides = [1, 1]} : vector<2x128xf32> to vector<2x32xf32>
    %239 = math.tanh %238 : vector<2x32xf32>
    %240 = vector.extract_strided_slice %237 {offsets = [0, 0], sizes = [2, 32], strides = [1, 1]} : vector<2x96xf32> to vector<2x32xf32>
    %241 = vector.extract_strided_slice %237 {offsets = [0, 32], sizes = [2, 32], strides = [1, 1]} : vector<2x96xf32> to vector<2x32xf32>
    %242 = vector.extract_strided_slice %237 {offsets = [0, 64], sizes = [2, 32], strides = [1, 1]} : vector<2x96xf32> to vector<2x32xf32>
    %243 = arith.mulf %241, %222 : vector<2x32xf32>
    %244 = arith.mulf %240, %239 : vector<2x32xf32>
    %245 = arith.addf %243, %244 : vector<2x32xf32>
    %246 = math.tanh %245 : vector<2x32xf32>
    %247 = arith.mulf %242, %246 : vector<2x32xf32>
    %248 = vector.extract_strided_slice %179 {offsets = [4, 0], sizes = [2, 128], strides = [1, 1]} : vector<16x128xf32> to vector<2x128xf32>
    %249 = vector.extract_strided_slice %179 {offsets = [10, 0], sizes = [2, 128], strides = [1, 1]} : vector<16x128xf32> to vector<2x128xf32>
    %250 = vector.shape_cast %199 : vector<1x128xi1> to vector<1x128xi1>
    %251 = vector.broadcast %250 : vector<1x128xi1> to vector<2x128xi1>
    %252 = arith.select %251, %248, %249 : vector<2x128xi1>, vector<2x128xf32>
    %cst_79 = arith.constant dense<0.000000e+00> : vector<2x128xf32>
    %253 = tpu.matmul %247, %180, %cst_79 {dimension_numbers = #tpu.dot_dimension_numbers<[1], [0], [0], [1], [0, 0, 1, 1], [], []>} : vector<2x32xf32>, vector<32x128xf32>, vector<2x128xf32> -> vector<2x128xf32>
    %254 = arith.addf %252, %253 : vector<2x128xf32>
    %255 = vector.extract_strided_slice %254 {offsets = [0, 0], sizes = [2, 96], strides = [1, 1]} : vector<2x128xf32> to vector<2x96xf32>
    %256 = arith.negf %255 : vector<2x96xf32>
    %257 = math.exp %256 : vector<2x96xf32>
    %cst_80 = arith.constant 1.000000e+00 : f32
    %258 = vector.broadcast %cst_80 : f32 to vector<2x96xf32>
    %259 = arith.addf %258, %257 : vector<2x96xf32>
    %260 = arith.divf %258, %259 : vector<2x96xf32>
    %261 = vector.extract_strided_slice %254 {offsets = [0, 96], sizes = [2, 32], strides = [1, 1]} : vector<2x128xf32> to vector<2x32xf32>
    %262 = math.tanh %261 : vector<2x32xf32>
    %263 = vector.extract_strided_slice %260 {offsets = [0, 0], sizes = [2, 32], strides = [1, 1]} : vector<2x96xf32> to vector<2x32xf32>
    %264 = vector.extract_strided_slice %260 {offsets = [0, 32], sizes = [2, 32], strides = [1, 1]} : vector<2x96xf32> to vector<2x32xf32>
    %265 = vector.extract_strided_slice %260 {offsets = [0, 64], sizes = [2, 32], strides = [1, 1]} : vector<2x96xf32> to vector<2x32xf32>
    %266 = arith.mulf %264, %245 : vector<2x32xf32>
    %267 = arith.mulf %263, %262 : vector<2x32xf32>
    %268 = arith.addf %266, %267 : vector<2x32xf32>
    %269 = math.tanh %268 : vector<2x32xf32>
    %270 = arith.mulf %265, %269 : vector<2x32xf32>
    %271 = vector.extract_strided_slice %179 {offsets = [6, 0], sizes = [2, 128], strides = [1, 1]} : vector<16x128xf32> to vector<2x128xf32>
    %272 = vector.extract_strided_slice %179 {offsets = [8, 0], sizes = [2, 128], strides = [1, 1]} : vector<16x128xf32> to vector<2x128xf32>
    %273 = vector.shape_cast %199 : vector<1x128xi1> to vector<1x128xi1>
    %274 = vector.broadcast %273 : vector<1x128xi1> to vector<2x128xi1>
    %275 = arith.select %274, %271, %272 : vector<2x128xi1>, vector<2x128xf32>
    %cst_81 = arith.constant dense<0.000000e+00> : vector<2x128xf32>
    %276 = tpu.matmul %270, %180, %cst_81 {dimension_numbers = #tpu.dot_dimension_numbers<[1], [0], [0], [1], [0, 0, 1, 1], [], []>} : vector<2x32xf32>, vector<32x128xf32>, vector<2x128xf32> -> vector<2x128xf32>
    %277 = arith.addf %275, %276 : vector<2x128xf32>
    %278 = vector.extract_strided_slice %277 {offsets = [0, 0], sizes = [2, 96], strides = [1, 1]} : vector<2x128xf32> to vector<2x96xf32>
    %279 = arith.negf %278 : vector<2x96xf32>
    %280 = math.exp %279 : vector<2x96xf32>
    %cst_82 = arith.constant 1.000000e+00 : f32
    %281 = vector.broadcast %cst_82 : f32 to vector<2x96xf32>
    %282 = arith.addf %281, %280 : vector<2x96xf32>
    %283 = arith.divf %281, %282 : vector<2x96xf32>
    %284 = vector.extract_strided_slice %277 {offsets = [0, 96], sizes = [2, 32], strides = [1, 1]} : vector<2x128xf32> to vector<2x32xf32>
    %285 = math.tanh %284 : vector<2x32xf32>
    %286 = vector.extract_strided_slice %283 {offsets = [0, 0], sizes = [2, 32], strides = [1, 1]} : vector<2x96xf32> to vector<2x32xf32>
    %287 = vector.extract_strided_slice %283 {offsets = [0, 32], sizes = [2, 32], strides = [1, 1]} : vector<2x96xf32> to vector<2x32xf32>
    %288 = vector.extract_strided_slice %283 {offsets = [0, 64], sizes = [2, 32], strides = [1, 1]} : vector<2x96xf32> to vector<2x32xf32>
    %289 = arith.mulf %287, %268 : vector<2x32xf32>
    %290 = arith.mulf %286, %285 : vector<2x32xf32>
    %291 = arith.addf %289, %290 : vector<2x32xf32>
    %292 = math.tanh %291 : vector<2x32xf32>
    %293 = arith.mulf %288, %292 : vector<2x32xf32>
    %294 = vector.extract_strided_slice %179 {offsets = [8, 0], sizes = [2, 128], strides = [1, 1]} : vector<16x128xf32> to vector<2x128xf32>
    %295 = vector.extract_strided_slice %179 {offsets = [6, 0], sizes = [2, 128], strides = [1, 1]} : vector<16x128xf32> to vector<2x128xf32>
    %296 = vector.shape_cast %199 : vector<1x128xi1> to vector<1x128xi1>
    %297 = vector.broadcast %296 : vector<1x128xi1> to vector<2x128xi1>
    %298 = arith.select %297, %294, %295 : vector<2x128xi1>, vector<2x128xf32>
    %cst_83 = arith.constant dense<0.000000e+00> : vector<2x128xf32>
    %299 = tpu.matmul %293, %180, %cst_83 {dimension_numbers = #tpu.dot_dimension_numbers<[1], [0], [0], [1], [0, 0, 1, 1], [], []>} : vector<2x32xf32>, vector<32x128xf32>, vector<2x128xf32> -> vector<2x128xf32>
    %300 = arith.addf %298, %299 : vector<2x128xf32>
    %301 = vector.extract_strided_slice %300 {offsets = [0, 0], sizes = [2, 96], strides = [1, 1]} : vector<2x128xf32> to vector<2x96xf32>
    %302 = arith.negf %301 : vector<2x96xf32>
    %303 = math.exp %302 : vector<2x96xf32>
    %cst_84 = arith.constant 1.000000e+00 : f32
    %304 = vector.broadcast %cst_84 : f32 to vector<2x96xf32>
    %305 = arith.addf %304, %303 : vector<2x96xf32>
    %306 = arith.divf %304, %305 : vector<2x96xf32>
    %307 = vector.extract_strided_slice %300 {offsets = [0, 96], sizes = [2, 32], strides = [1, 1]} : vector<2x128xf32> to vector<2x32xf32>
    %308 = math.tanh %307 : vector<2x32xf32>
    %309 = vector.extract_strided_slice %306 {offsets = [0, 0], sizes = [2, 32], strides = [1, 1]} : vector<2x96xf32> to vector<2x32xf32>
    %310 = vector.extract_strided_slice %306 {offsets = [0, 32], sizes = [2, 32], strides = [1, 1]} : vector<2x96xf32> to vector<2x32xf32>
    %311 = vector.extract_strided_slice %306 {offsets = [0, 64], sizes = [2, 32], strides = [1, 1]} : vector<2x96xf32> to vector<2x32xf32>
    %312 = arith.mulf %310, %291 : vector<2x32xf32>
    %313 = arith.mulf %309, %308 : vector<2x32xf32>
    %314 = arith.addf %312, %313 : vector<2x32xf32>
    %315 = math.tanh %314 : vector<2x32xf32>
    %316 = arith.mulf %311, %315 : vector<2x32xf32>
    %317 = vector.extract_strided_slice %179 {offsets = [10, 0], sizes = [2, 128], strides = [1, 1]} : vector<16x128xf32> to vector<2x128xf32>
    %318 = vector.extract_strided_slice %179 {offsets = [4, 0], sizes = [2, 128], strides = [1, 1]} : vector<16x128xf32> to vector<2x128xf32>
    %319 = vector.shape_cast %199 : vector<1x128xi1> to vector<1x128xi1>
    %320 = vector.broadcast %319 : vector<1x128xi1> to vector<2x128xi1>
    %321 = arith.select %320, %317, %318 : vector<2x128xi1>, vector<2x128xf32>
    %cst_85 = arith.constant dense<0.000000e+00> : vector<2x128xf32>
    %322 = tpu.matmul %316, %180, %cst_85 {dimension_numbers = #tpu.dot_dimension_numbers<[1], [0], [0], [1], [0, 0, 1, 1], [], []>} : vector<2x32xf32>, vector<32x128xf32>, vector<2x128xf32> -> vector<2x128xf32>
    %323 = arith.addf %321, %322 : vector<2x128xf32>
    %324 = vector.extract_strided_slice %323 {offsets = [0, 0], sizes = [2, 96], strides = [1, 1]} : vector<2x128xf32> to vector<2x96xf32>
    %325 = arith.negf %324 : vector<2x96xf32>
    %326 = math.exp %325 : vector<2x96xf32>
    %cst_86 = arith.constant 1.000000e+00 : f32
    %327 = vector.broadcast %cst_86 : f32 to vector<2x96xf32>
    %328 = arith.addf %327, %326 : vector<2x96xf32>
    %329 = arith.divf %327, %328 : vector<2x96xf32>
    %330 = vector.extract_strided_slice %323 {offsets = [0, 96], sizes = [2, 32], strides = [1, 1]} : vector<2x128xf32> to vector<2x32xf32>
    %331 = math.tanh %330 : vector<2x32xf32>
    %332 = vector.extract_strided_slice %329 {offsets = [0, 0], sizes = [2, 32], strides = [1, 1]} : vector<2x96xf32> to vector<2x32xf32>
    %333 = vector.extract_strided_slice %329 {offsets = [0, 32], sizes = [2, 32], strides = [1, 1]} : vector<2x96xf32> to vector<2x32xf32>
    %334 = vector.extract_strided_slice %329 {offsets = [0, 64], sizes = [2, 32], strides = [1, 1]} : vector<2x96xf32> to vector<2x32xf32>
    %335 = arith.mulf %333, %314 : vector<2x32xf32>
    %336 = arith.mulf %332, %331 : vector<2x32xf32>
    %337 = arith.addf %335, %336 : vector<2x32xf32>
    %338 = math.tanh %337 : vector<2x32xf32>
    %339 = arith.mulf %334, %338 : vector<2x32xf32>
    %340 = vector.extract_strided_slice %179 {offsets = [12, 0], sizes = [2, 128], strides = [1, 1]} : vector<16x128xf32> to vector<2x128xf32>
    %341 = vector.extract_strided_slice %179 {offsets = [2, 0], sizes = [2, 128], strides = [1, 1]} : vector<16x128xf32> to vector<2x128xf32>
    %342 = vector.shape_cast %199 : vector<1x128xi1> to vector<1x128xi1>
    %343 = vector.broadcast %342 : vector<1x128xi1> to vector<2x128xi1>
    %344 = arith.select %343, %340, %341 : vector<2x128xi1>, vector<2x128xf32>
    %cst_87 = arith.constant dense<0.000000e+00> : vector<2x128xf32>
    %345 = tpu.matmul %339, %180, %cst_87 {dimension_numbers = #tpu.dot_dimension_numbers<[1], [0], [0], [1], [0, 0, 1, 1], [], []>} : vector<2x32xf32>, vector<32x128xf32>, vector<2x128xf32> -> vector<2x128xf32>
    %346 = arith.addf %344, %345 : vector<2x128xf32>
    %347 = vector.extract_strided_slice %346 {offsets = [0, 0], sizes = [2, 96], strides = [1, 1]} : vector<2x128xf32> to vector<2x96xf32>
    %348 = arith.negf %347 : vector<2x96xf32>
    %349 = math.exp %348 : vector<2x96xf32>
    %cst_88 = arith.constant 1.000000e+00 : f32
    %350 = vector.broadcast %cst_88 : f32 to vector<2x96xf32>
    %351 = arith.addf %350, %349 : vector<2x96xf32>
    %352 = arith.divf %350, %351 : vector<2x96xf32>
    %353 = vector.extract_strided_slice %346 {offsets = [0, 96], sizes = [2, 32], strides = [1, 1]} : vector<2x128xf32> to vector<2x32xf32>
    %354 = math.tanh %353 : vector<2x32xf32>
    %355 = vector.extract_strided_slice %352 {offsets = [0, 0], sizes = [2, 32], strides = [1, 1]} : vector<2x96xf32> to vector<2x32xf32>
    %356 = vector.extract_strided_slice %352 {offsets = [0, 32], sizes = [2, 32], strides = [1, 1]} : vector<2x96xf32> to vector<2x32xf32>
    %357 = vector.extract_strided_slice %352 {offsets = [0, 64], sizes = [2, 32], strides = [1, 1]} : vector<2x96xf32> to vector<2x32xf32>
    %358 = arith.mulf %356, %337 : vector<2x32xf32>
    %359 = arith.mulf %355, %354 : vector<2x32xf32>
    %360 = arith.addf %358, %359 : vector<2x32xf32>
    %361 = math.tanh %360 : vector<2x32xf32>
    %362 = arith.mulf %357, %361 : vector<2x32xf32>
    %363 = vector.extract_strided_slice %179 {offsets = [14, 0], sizes = [2, 128], strides = [1, 1]} : vector<16x128xf32> to vector<2x128xf32>
    %364 = vector.extract_strided_slice %179 {offsets = [0, 0], sizes = [2, 128], strides = [1, 1]} : vector<16x128xf32> to vector<2x128xf32>
    %365 = vector.shape_cast %199 : vector<1x128xi1> to vector<1x128xi1>
    %366 = vector.broadcast %365 : vector<1x128xi1> to vector<2x128xi1>
    %367 = arith.select %366, %363, %364 : vector<2x128xi1>, vector<2x128xf32>
    %cst_89 = arith.constant dense<0.000000e+00> : vector<2x128xf32>
    %368 = tpu.matmul %362, %180, %cst_89 {dimension_numbers = #tpu.dot_dimension_numbers<[1], [0], [0], [1], [0, 0, 1, 1], [], []>} : vector<2x32xf32>, vector<32x128xf32>, vector<2x128xf32> -> vector<2x128xf32>
    %369 = arith.addf %367, %368 : vector<2x128xf32>
    %370 = vector.extract_strided_slice %369 {offsets = [0, 0], sizes = [2, 96], strides = [1, 1]} : vector<2x128xf32> to vector<2x96xf32>
    %371 = arith.negf %370 : vector<2x96xf32>
    %372 = math.exp %371 : vector<2x96xf32>
    %cst_90 = arith.constant 1.000000e+00 : f32
    %373 = vector.broadcast %cst_90 : f32 to vector<2x96xf32>
    %374 = arith.addf %373, %372 : vector<2x96xf32>
    %375 = arith.divf %373, %374 : vector<2x96xf32>
    %376 = vector.extract_strided_slice %369 {offsets = [0, 96], sizes = [2, 32], strides = [1, 1]} : vector<2x128xf32> to vector<2x32xf32>
    %377 = math.tanh %376 : vector<2x32xf32>
    %378 = vector.extract_strided_slice %375 {offsets = [0, 0], sizes = [2, 32], strides = [1, 1]} : vector<2x96xf32> to vector<2x32xf32>
    %379 = vector.extract_strided_slice %375 {offsets = [0, 32], sizes = [2, 32], strides = [1, 1]} : vector<2x96xf32> to vector<2x32xf32>
    %380 = vector.extract_strided_slice %375 {offsets = [0, 64], sizes = [2, 32], strides = [1, 1]} : vector<2x96xf32> to vector<2x32xf32>
    %381 = arith.mulf %379, %360 : vector<2x32xf32>
    %382 = arith.mulf %378, %377 : vector<2x32xf32>
    %383 = arith.addf %381, %382 : vector<2x32xf32>
    %384 = math.tanh %383 : vector<2x32xf32>
    %385 = arith.mulf %380, %384 : vector<2x32xf32>
    %c11 = arith.constant 11 : index
    %c0_91 = arith.constant 0 : index
    %386 = vector.load %arg5[%c11, %c0_91] : memref<16x128xf32, #tpu.memory_space<vmem>>, vector<1x32xf32>
    %387 = vector.broadcast %386 : vector<1x32xf32> to vector<2x32xf32>
    %388 = arith.mulf %385, %387 : vector<2x32xf32>
    %c12 = arith.constant 12 : index
    %c0_92 = arith.constant 0 : index
    %389 = vector.load %arg5[%c12, %c0_92] : memref<16x128xf32, #tpu.memory_space<vmem>>, vector<1x32xf32>
    %390 = vector.broadcast %389 : vector<1x32xf32> to vector<2x32xf32>
    %391 = arith.addf %388, %390 : vector<2x32xf32>
    %c0_93 = arith.constant 0 : index
    %c640 = arith.constant 640 : index
    %392 = vector.load %arg3[%c0_93, %c640] : memref<32x896xf32, #tpu.memory_space<vmem>>, vector<32x16xf32>
    %cst_94 = arith.constant dense<0.000000e+00> : vector<2x16xf32>
    %393 = tpu.matmul %391, %392, %cst_94 {dimension_numbers = #tpu.dot_dimension_numbers<[1], [0], [0], [1], [0, 0, 1, 1], [], []>} : vector<2x32xf32>, vector<32x16xf32>, vector<2x16xf32> -> vector<2x16xf32>
    %c13 = arith.constant 13 : index
    %c0_95 = arith.constant 0 : index
    %394 = vector.load %arg5[%c13, %c0_95] : memref<16x128xf32, #tpu.memory_space<vmem>>, vector<1x16xf32>
    %395 = vector.broadcast %394 : vector<1x16xf32> to vector<2x16xf32>
    %396 = arith.addf %393, %395 : vector<2x16xf32>
    %cst_96 = arith.constant 0.000000e+00 : f32
    %397 = vector.broadcast %cst_96 : f32 to vector<2x16xf32>
    %398 = arith.maximumf %396, %397 : vector<2x16xf32>
    %c14 = arith.constant 14 : index
    %c0_97 = arith.constant 0 : index
    %399 = vector.load %arg5[%c14, %c0_97] : memref<16x128xf32, #tpu.memory_space<vmem>>, vector<1x16xf32>
    %400 = vector.broadcast %399 : vector<1x16xf32> to vector<2x16xf32>
    %401 = arith.mulf %398, %400 : vector<2x16xf32>
    %cst_98 = arith.constant dense<0.000000e+00> : vector<2xf32>
    %402 = vector.multi_reduction <add>, %401, %cst_98 [1] : vector<2x16xf32> to vector<2xf32>
    %403 = vector.shape_cast %402 : vector<2xf32> to vector<2x1xf32>
    %c15 = arith.constant 15 : index
    %c0_99 = arith.constant 0 : index
    %404 = vector.load %arg5[%c15, %c0_99] : memref<16x128xf32, #tpu.memory_space<vmem>>, vector<1x1xf32>
    %405 = vector.broadcast %404 : vector<1x1xf32> to vector<2x1xf32>
    %406 = arith.addf %403, %405 : vector<2x1xf32>
    %c0_100 = arith.constant 0 : index
    %c0_101 = arith.constant 0 : index
    %407 = vector.load %arg6[%c0_100, %c0_101] : memref<2x1xf32, #tpu.memory_space<vmem>>, vector<2x1xf32>
    tpu.vector_store %arg6[%c0_100, %c0_101], %406 {strides = array<i32>} : memref<2x1xf32, #tpu.memory_space<vmem>>, vector<2x1xf32>,
    return
  }
  func.func @transform_0(%arg0: i32) -> (i32, i32) {
    %c0_i32 = arith.constant 0 : i32
    %c0_i32_0 = arith.constant 0 : i32
    %c0_i32_1 = arith.constant 0 : i32
    return %c0_i32, %c0_i32_0 : i32, i32
  }
  func.func @transform_1(%arg0: i32) -> (i32, i32) {
    %c0_i32 = arith.constant 0 : i32
    %c0_i32_0 = arith.constant 0 : i32
    %c0_i32_1 = arith.constant 0 : i32
    return %c0_i32, %c0_i32_0 : i32, i32
  }
  func.func @transform_2(%arg0: i32) -> (i32, i32) {
    %c0_i32 = arith.constant 0 : i32
    %c0_i32_0 = arith.constant 0 : i32
    %c0_i32_1 = arith.constant 0 : i32
    return %c0_i32, %c0_i32_0 : i32, i32
  }
  func.func @transform_3(%arg0: i32) -> (i32, i32) {
    %c0_i32 = arith.constant 0 : i32
    %c0_i32_0 = arith.constant 0 : i32
    %c0_i32_1 = arith.constant 0 : i32
    return %c0_i32, %c0_i32_0 : i32, i32
  }
  func.func @transform_4(%arg0: i32) -> (i32, i32) {
    %c0_i32 = arith.constant 0 : i32
    %c0_i32_0 = arith.constant 0 : i32
    %c0_i32_1 = arith.constant 0 : i32
    return %c0_i32, %c0_i32_0 : i32, i32
  }
  func.func @transform_5(%arg0: i32) -> (i32, i32) {
    %c0_i32 = arith.constant 0 : i32
    %c0_i32_0 = arith.constant 0 : i32
    %c0_i32_1 = arith.constant 0 : i32
    return %c0_i32, %c0_i32_0 : i32, i32
  }
}

</mosaic_0001>

<bundles_post_ra>
// kernel: forward.1
= control target key start
LH: loop header
LB: loop body
LE: loop exit
PB: predicated region body
PF: predicated region fallthrough
CT: control target
= control target key end

     0   :  { %10 = vsyncpa [#allocation3], 0  ;;  %s1960_s0 = inlined_call_operand.vmem [shape: s32[16,1], index: 0, kind: input, shape index: {}]   ;;  %s1961_s1 = inlined_call_operand.vmem [shape: f32[1,16], index: 1, kind: input, shape index: {}]   ;;  %s1962_s2 = inlined_call_operand.hbm [shape: f32[32,896], index: 2, kind: input, shape index: {}]   ;;  %s1963_s3 = inlined_call_operand.hbm [shape: f32[64,256], index: 3, kind: input, shape index: {}]   ;;  %s1964_s4 = inlined_call_operand.vmem [shape: f32[16,128], index: 4, kind: input, shape index: {}]   ;;  %s1965_s5 = inlined_call_operand.vmem [shape: f32[2,1], index: 5, kind: output, shape index: {}]  }
   0x1   :  { %s20_s20 = sshll.u32 %s1962_s2, 4  ;;  %s21_s20 = int_to_ptr.hbm [resolvable:$true] %s20_s20 }
   0x2   :  { %11 = vsyncpa [#allocation5], 0  ;;  %s1657_s21 = smov [#allocation2]   ;;  %s33_s25 = sshll.u32 %s1963_s3, 4  ;;  %s34_s25 = int_to_ptr.hbm [resolvable:$true] %s33_s25 }
   0x3   :  { %s22_s22 = sshll.u32 %s1657_s21, 4  ;;  %s1658_s26 = smov 896   ;;  %s23_s22 = int_to_ptr.vmem [resolvable:$true] %s22_s22 }
   0x4   :  { %s1659_s27 = smov 56   ;;  %s1660_s28 = smov [#allocation4]  }
   0x5   :  { %28 = dma.hbm_to_vmem [thread:$0]  %s21_s20, 3584, %s23_s22, [#allocation3], %s1658_s26, %s1658_s26, %s1659_s27  }
   0x6   :  { %s35_s29 = sshll.u32 %s1660_s28, 4  ;;  %s1661_s30 = smov 256   ;;  %s36_s29 = int_to_ptr.vmem [resolvable:$true] %s35_s29 }
   0x7   :  { %s1662_s6 = smov 16  }
   0x8   :  { %41 = dma.hbm_to_vmem [thread:$0]  %s34_s25, 2048, %s36_s29, [#allocation5], %s1661_s30, %s1661_s30, %s1662_s6  }
   0x9   :  { %1653 = dma.done.wait [#allocation3], 3584  }
   0xa   :  { %1654 = vsyncadd [#allocation3], 4294963712 }
   0xb   :  { %1655 = dma.done.wait [#allocation5], 2048  }
   0xc   :  { %1656 = vsyncadd [#allocation5], 4294965248  ;;  %v1663_v0 = vmov 0   ;;  %v52_v1 = vld [vmem:[%s1960_s0] sm:$0xff]  ;;  %v76_v2 = vld [vmem:[#allocation4 + $0x70] sm:$0xff]  ;;  %v55_v11 = vlaneseq  ;;  %vm79_vm0 = vcmask 523264  }
   0xd   :  { %1480 = vset.pattern.permute.xlu0 %v1663_v0  ;;  %94 = vmatpush.msra.mxu0 %v76_v2  ;;  %v75_v3 = vld [vmem:[#allocation4 + $0x60] sm:$0xff]  ;;  %v74_v4 = vld [vmem:[#allocation4 + $0x50] sm:$0xff]  ;;  %v53_v6 = vld [vmem:[%s1960_s0 + $0x8] sm:$0xff]  ;;  %v1664_v14 = vmov 0.0   ;;  %vm111_vm3 = vcmask 261120   ;;  %v1665_v26 = vmov 32.0  }
   0xe   :  { %58 = vperm.xlu0 %1480, %v52_v1   ;;  %v73_v5 = vld [vmem:[#allocation4 + $0x40] sm:$0xff]  ;;  %v72_v7 = vld [vmem:[#allocation4 + $0x30] sm:$0xff]  ;;  %v1716_v12 = vand.u32 127, %v55_v11  ;;  %v78_v22 = vld [vmem:[#allocation2 + $0x68] sm:$0xff]  ;;  %1507 = vrcp.f32 %v1665_v26  ;;  %s1666_s14 = smov 96   ;;  %s1667_s15 = smov 80  }
   0xf   :  { %95 = vmatpush.msra.mxu0 %v75_v3  ;;  %v71_v8 = vld [vmem:[#allocation4 + $0x20] sm:$0xff]  ;;  %v70_v9 = vld [vmem:[#allocation4 + $0x10] sm:$0xff]  ;;  %v189_v43 = vld [vmem:[#allocation2 + $0xb8] sm:$0xff]  ;;  %s1668_s16 = smov 112   ;;  %vm228_vm11 = vcmask 130048   ;;  %v170_v26 = vshrl.u32 %v55_v11, 7 }
  0x10   :  { %v69_v10 = vld [vmem:[#allocation4] sm:$0xff]  ;;  %v77_v18 = vld [vmem:[#allocation2 + $0x30] sm:$0xff]  ;;  %210 = vmatpush.msra.mxu1 %v189_v43  ;;  %v187_v45 = vld [vmem:[#allocation2 + $0x48] sm:$0xff]  ;;  %s1671_s19 = smov 64   ;;  %s1672_s0 = smov 32  }
  0x11   :  { %96 = vmatpush.msra.mxu0 %v74_v4  ;;  %v188_v44 = vld [vmem:[#allocation2 + $0x80] sm:$0xff]  ;;  %v186_v46 = vld [vmem:[#allocation2 + $0x10] sm:$0xff] }
  0x12   :  { %211 = vmatpush.msra.mxu1 %v188_v44  ;;  %v1491_v61 = vld [vmem:[%s1964_s4] ss:$0 sm:$0xff]  ;;  %v1492_v1 = vld [vmem:[%s1964_s4 + $0x1] ss:$0 sm:$0xff] }
  0x13   :  { %97 = vmatpush.msra.mxu0 %v73_v5 }
  0x14   :  { %v1508_v27 = vpop.eup %1507  ;;  %212 = vmatpush.msra.mxu1 %v187_v45 }
  0x15   :  { %98 = vmatpush.msra.mxu0 %v72_v7  ;;  %v119_v28 = vmul.f32 32.0, %v1508_v27  ;;  %vm123_vm4 = vweird.f32 %v1508_v27 }
  0x16   :  { %61 = vperm.xlu0 %1480, %v53_v6   ;;  %213 = vmatpush.msra.mxu1 %v186_v46 }
  0x17   :  { %99 = vmatpush.msra.mxu0 %v71_v8  ;;  %v120_v29 = vsub.f32 1.0, %v119_v28  ;;  %v172_v28 = vand.u32 1, %v170_v26 }
  0x19   :  { %100 = vmatpush.msra.mxu0 %v70_v9  ;;  %v121_v30 = vmul.f32 %v1508_v27, %v120_v29  ;;  %v174_v29 = vand.u32 1, %v1716_v12 }
  0x1b   :  { %101 = vmatpush.msra.mxu0 %v69_v10  ;;  %v122_v31 = vadd.f32 %v1508_v27, %v121_v30  ;;  %vm175_vm12 = vcmp.eq.s32.totalorder %v172_v28, %v174_v29 }
  0x1d   :  { %v1726_v32 = vsel %vm123_vm4, %v1508_v27, %v122_v31  ;;  %v171_v31 = vadd.s32 8, %v170_v26 }
  0x80   :  { %v59_v13 = vpop.permute.xlu0 %58 }
  0x81   :  { %vm63_vm1 = vcmp.eq.s32.totalorder %v59_v13, %v1716_v12  ;;  %v1493_v13 = vld [vmem:[%s1964_s4 + $0x2] ss:$0 sm:$0xff] }
  0x82   :  { %v1419_v15 = vsel %vm63_vm1, 1.0, %v1664_v14 }
  0x83   :  { %1421 = vmatmul.msk.f32.vlgmr.msra.gmra.mxu0 %vm79_vm0, %v1419_v15 }
  0x88   :  { %v62_v16 = vpop.permute.xlu0 %61 }
  0x89   :  { %vm64_vm2 = vcmp.eq.s32.totalorder %v62_v16, %v1716_v12 }
  0x8a   :  { %v1420_v17 = vsel %vm64_vm2, 1.0, %v1664_v14 }
  0x8b   :  { %1422 = vmatmul.msk.f32.gmra.mxu0 %vm79_vm0, %v1420_v17 }
 0x100   :  { %v103_v19 = vpop.f32.mrf.mxu0 }
 0x101   :  { %v104_v20 = vadd.f32 %v103_v19, %v77_v18 }
 0x103   :  { %v112_v21 = vsel %vm111_vm3, %v104_v20, 0.0 }
 0x104   :  { %113 = vadd.xlane.f32.xlu1 %v112_v21 }
 0x108   :  { %v106_v23 = vpop.f32.mrf.mxu0 }
 0x109   :  { %v107_v24 = vadd.f32 %v106_v23, %v78_v22 }
 0x10b   :  { %v115_v25 = vsel %vm111_vm3, %v107_v24, 0.0 }
 0x10c   :  { %116 = vadd.xlane.f32.xlu1 %v115_v25  ;;  %v54_v25 = vld [vmem:[%s1961_s1] sm:$0x1]  ;;  %s1670_s1 = smov 48  }
 0x10d   :  { %v1423_v27 = vadd.f32 -1.0, %v54_v25 }
 0x10f   :  { %v180_v30 = vmul.f32 1e+09, %v1423_v27 }
 0x177   :  { %v114_v33 = vpop.xlane.xlu1 %113 }
 0x178   :  { %v125_v34 = vmul.f32 %v1726_v32, %v114_v33  ;;  %v182_v33 = vperm.slane %v180_v30, 0 }
 0x17a   :  { %v127_v35 = vsub.f32 %v104_v20, %v125_v34  ;;  %v1669_v34 = vmov -1e+09  }
 0x17c   :  { %v129_v36 = vmul.f32 %v127_v35, %v127_v35 }
 0x17e   :  { %v131_v37 = vsel %vm111_vm3, %v129_v36, 0.0  ;;  %v173_v36 = vand.u32 1, %v171_v31 }
 0x17f   :  { %132 = vadd.xlane.f32.xlu2 %v131_v37  ;;  %v117_v38 = vpop.xlane.xlu1 %116 }
 0x180   :  { %v126_v39 = vmul.f32 %v1726_v32, %v117_v38  ;;  %vm176_vm13 = vcmp.eq.s32.totalorder %v173_v36, %v174_v29 }
 0x181   :  { %v178_v43 = vsel %vm176_vm13, 0.0, %v1669_v34 }
 0x182   :  { %v128_v40 = vsub.f32 %v107_v24, %v126_v39  ;;  %v185_v45 = vadd.f32 %v182_v33, %v178_v43 }
 0x184   :  { %v130_v41 = vmul.f32 %v128_v40, %v128_v40 }
 0x186   :  { %v134_v42 = vsel %vm111_vm3, %v130_v41, 0.0 }
 0x187   :  { %135 = vadd.xlane.f32.xlu2 %v134_v42 }
 0x1f2   :  { %v133_v47 = vpop.xlane.xlu2 %132 }
 0x1f3   :  { %v137_v48 = vmul.f32 %v133_v47, %v1726_v32 }
 0x1f5   :  { %v139_v49 = vadd.f32 1e-12, %v137_v48 }
 0x1f7   :  { %1509 = vrsqrt.f32 %v139_v49  ;;  %vm147_vm6 = vweird.f32 %v139_v49 }
 0x1fa   :  { %v136_v50 = vpop.xlane.xlu2 %135 }
 0x1fb   :  { %v138_v51 = vmul.f32 %v136_v50, %v1726_v32 }
 0x1fd   :  { %v1510_v52 = vpop.eup %1509  ;;  %v140_v53 = vadd.f32 1e-12, %v138_v51 }
 0x1fe   :  { %v142_v54 = vmul.f32 %v1510_v52, %v139_v49  ;;  %vm148_vm5 = vweird.f32 %v1510_v52 }
 0x1ff   :  { %1511 = vrsqrt.f32 %v140_v53  ;;  %vm149_vm7 = vmor %vm147_vm6, %vm148_vm5  ;;  %vm157_vm9 = vweird.f32 %v140_v53 }
 0x200   :  { %v143_v55 = vmul.f32 %v1510_v52, %v142_v54 }
 0x202   :  { %v144_v56 = vmul.f32 0.5, %v143_v55 }
 0x204   :  { %v145_v57 = vsub.f32 1.5, %v144_v56 }
 0x205   :  { %v1512_v58 = vpop.eup %1511 }
 0x206   :  { %v146_v59 = vmul.f32 %v1510_v52, %v145_v57  ;;  %v152_v60 = vmul.f32 %v1512_v58, %v140_v53  ;;  %vm158_vm8 = vweird.f32 %v1512_v58 }
 0x207   :  { %vm159_vm10 = vmor %vm157_vm9, %vm158_vm8 }
 0x208   :  { %v150_v62 = vsel %vm149_vm7, %v1510_v52, %v146_v59  ;;  %v153_v63 = vmul.f32 %v1512_v58, %v152_v60 }
 0x209   :  { %v161_v0 = vmul.f32 %v150_v62, %v127_v35  ;;  %v177_v35 = vsel %vm175_vm12, 0.0, %v1669_v34 }
 0x20a   :  { %v154_v2 = vmul.f32 0.5, %v153_v63  ;;  %v184_v37 = vadd.f32 %v182_v33, %v177_v35 }
 0x20b   :  { %v164_v3 = vmul.f32 %v1491_v61, %v161_v0 }
 0x20c   :  { %v155_v4 = vsub.f32 1.5, %v154_v2 }
 0x20d   :  { %v1740_v5 = vadd.f32 %v1492_v1, %v164_v3 }
 0x20e   :  { %v156_v6 = vmul.f32 %v1512_v58, %v155_v4 }
 0x20f   :  { %1424 = vmatmul.msk.f32.vlgmr.msra.gmra.mxu1 %vm111_vm3, %v1740_v5 }
 0x210   :  { %v160_v7 = vsel %vm159_vm10, %v1512_v58, %v156_v6 }
 0x211   :  { %v162_v8 = vmul.f32 %v160_v7, %v128_v40 }
 0x213   :  { %v165_v9 = vmul.f32 %v1491_v61, %v162_v8 }
 0x215   :  { %v1744_v10 = vadd.f32 %v1492_v1, %v165_v9 }
 0x217   :  { %1425 = vmatmul.msk.f32.gmra.mxu1 %vm111_vm3, %v1744_v10 }
 0x28c   :  { %v215_v15 = vpop.f32.mrf.mxu1 }
 0x28d   :  { %v1751_v16 = vadd.f32 %v1493_v13, %v215_v15 }
 0x28f   :  { %224 = vrot.lane.b32.xlu1 %v1751_v16, %s1666_s14 }
 0x294   :  { %v218_v17 = vpop.f32.mrf.mxu1 }
 0x295   :  { %v1754_v18 = vadd.f32 %v1493_v13, %v218_v17 }
 0x297   :  { %387 = vrot.lane.b32.xlu2 %v1754_v18, %s1667_s15  ;;  %226 = vrot.lane.b32.xlu0 %v1754_v18, %s1666_s14  ;;  %v1486_v17 = vpack.i.bf16 %v1751_v16, %v1754_v18 }
 0x29f   :  { %385 = vrot.lane.b32.xlu0 %v1751_v16, %s1667_s15 }
 0x2a7   :  { %381 = vrot.lane.b32.xlu0 %v1751_v16, %s1668_s16 }
 0x2af   :  { %383 = vrot.lane.b32.xlu0 %v1754_v18, %s1668_s16 }
 0x2f1   :  { %v388_v19 = vpop.permute.xlu2 %387 }
 0x2f2   :  { %1434 = vmatpush.xpose.msk.msrb.mxu1 %vm228_vm11, %v388_v19 }
 0x301   :  { %v225_v21 = vpop.permute.xlu1 %224 }
 0x309   :  { %v227_v20 = vpop.permute.xlu0 %226 }
 0x30a   :  { %1426 = vmatpush.xpose.msk.msra.mxu2 %vm228_vm11, %v227_v20 }
 0x30e   :  { %1427 = vmatpush.xpose.msk.msra.mxu2 %vm228_vm11, %v225_v21 }
 0x311   :  { %v386_v22 = vpop.permute.xlu0 %385  ;;  %1428 = vmatmul.msk.f32.vlgmr.msra.gmra.mxu2 %vm228_vm11, %v1751_v16 }
 0x312   :  { %1435 = vmatpush.xpose.msk.msrb.mxu1 %vm228_vm11, %v386_v22 }
 0x319   :  { %v382_v23 = vpop.permute.xlu0 %381  ;;  %1429 = vmatmul.msk.f32.gmra.mxu2 %vm228_vm11, %v1754_v18 }
 0x31a   :  { %1436 = vmatmul.msk.f32.vlgmr.msrb.gmra.mxu1 %vm228_vm11, %v382_v23 }
 0x321   :  { %v384_v24 = vpop.permute.xlu0 %383 }
 0x322   :  { %1437 = vmatmul.msk.f32.gmra.mxu1 %vm228_vm11, %v384_v24 }
 0x394   :  { %v254_v38 = vpop.f32.mrf.mxu2 }
 0x395   :  { %v260_v39 = vmul.f32 0.25, %v254_v38 }
 0x397   :  { %v414_v40 = vpop.f32.mrf.mxu1  ;;  %v262_v41 = vadd.f32 %v260_v39, %v184_v37 }
 0x398   :  { %v420_v42 = vmul.f32 0.25, %v414_v40 }
 0x399   :  { %v264_v11 = vsel %vm228_vm11, %v262_v41, -inf }
 0x39a   :  { %265 = vmax.xlane.f32.xlu2 %v264_v11  ;;  %v422_v44 = vadd.f32 %v420_v42, %v184_v37 }
 0x39c   :  { %v257_v46 = vpop.f32.mrf.mxu2  ;;  %v424_v47 = vsel %vm228_vm11, %v422_v44, -inf }
 0x39d   :  { %v261_v48 = vmul.f32 0.25, %v257_v46  ;;  %425 = vmax.xlane.f32.xlu0 %v424_v47 }
 0x39f   :  { %v417_v49 = vpop.f32.mrf.mxu1  ;;  %v263_v50 = vadd.f32 %v261_v48, %v185_v45 }
 0x3a0   :  { %v421_v51 = vmul.f32 0.25, %v417_v49 }
 0x3a1   :  { %v267_v52 = vsel %vm228_vm11, %v263_v50, -inf }
 0x3a2   :  { %268 = vmax.xlane.f32.xlu1 %v267_v52  ;;  %v423_v53 = vadd.f32 %v421_v51, %v185_v45  ;;  %v348_v52 = vld [vmem:[#allocation2 + $0x50] sm:$0xff] }
 0x3a4   :  { %v427_v54 = vsel %vm228_vm11, %v423_v53, -inf }
 0x3a5   :  { %428 = vmax.xlane.f32.xlu2 %v427_v54 }
 0x40d   :  { %v266_v55 = vpop.xlane.xlu2 %265 }
 0x40e   :  { %v270_v56 = vsub.f32 %v262_v41, %v266_v55 }
 0x410   :  { %v272_v57 = vmul.f32 1.442695, %v270_v56  ;;  %v426_v58 = vpop.xlane.xlu0 %425 }
 0x411   :  { %v430_v59 = vsub.f32 %v422_v44, %v426_v58  ;;  %v595_v44 = vld [vmem:[#allocation2 + $0x58] sm:$0xff] }
 0x412   :  { %1513 = vpow2.f32 %v272_v57 }
 0x413   :  { %v432_v60 = vmul.f32 1.442695, %v430_v59 }
 0x415   :  { %1515 = vpow2.f32 %v432_v60  ;;  %v269_v61 = vpop.xlane.xlu1 %268 }
 0x416   :  { %v271_v62 = vsub.f32 %v263_v50, %v269_v61 }
 0x418   :  { %v1780_v63 = vpop.eup %1513  ;;  %v274_v0 = vmul.f32 1.442695, %v271_v62  ;;  %v429_v1 = vpop.xlane.xlu2 %428 }
 0x419   :  { %v431_v2 = vsub.f32 %v423_v53, %v429_v1  ;;  %v276_v3 = vsel %vm228_vm11, %v1780_v63, 0.0 }
 0x41a   :  { %1517 = vpow2.f32 %v274_v0  ;;  %277 = vadd.xlane.f32.xlu1 %v276_v3 }
 0x41b   :  { %v1784_v4 = vpop.eup %1515  ;;  %v434_v6 = vmul.f32 1.442695, %v431_v2 }
 0x41c   :  { %v436_v7 = vsel %vm228_vm11, %v1784_v4, 0.0 }
 0x41d   :  { %1519 = vpow2.f32 %v434_v6  ;;  %437 = vadd.xlane.f32.xlu0 %v436_v7 }
 0x420   :  { %v1788_v8 = vpop.eup %1517 }
 0x421   :  { %v279_v9 = vsel %vm228_vm11, %v1788_v8, 0.0 }
 0x422   :  { %280 = vadd.xlane.f32.xlu2 %v279_v9 }
 0x423   :  { %v1792_v13 = vpop.eup %1519 }
 0x424   :  { %v439_v15 = vsel %vm228_vm11, %v1792_v13, 0.0 }
 0x425   :  { %440 = vadd.xlane.f32.xlu1 %v439_v15 }
 0x431   :  { %1487 = vrot.lane.b32.xlu0 %v1486_v17, %s1670_s1 }
 0x43a   :  { %1482 = vrot.lane.b32.xlu2 %v1486_v17, %s1671_s19 }
 0x48d   :  { %v278_v19 = vpop.xlane.xlu1 %277 }
 0x48e   :  { %1521 = vrcp.f32 %v278_v19  ;;  %v293_v26 = vand.u32 2147483648, %v278_v19  ;;  %v291_v18 = vand.u32 2147483647, %v278_v19  ;;  %vm287_vm15 = vweird.f32 %v278_v19 }
 0x490   :  { %v438_v20 = vpop.xlane.xlu0 %437  ;;  %v294_v33 = vor.u32 1.1754944e-38, %v293_v26  ;;  %vm292_vm4 = vcmp.eq.f32.partialorder %v291_v18, 8.507059e+37 }
 0x491   :  { %1523 = vrcp.f32 %v438_v20  ;;  %v453_v39 = vand.u32 2147483648, %v438_v20  ;;  %vm447_vm5 = vweird.f32 %v438_v20  ;;  %v451_v43 = vand.u32 2147483647, %v438_v20 }
 0x493   :  { %v454_v53 = vor.u32 1.1754944e-38, %v453_v39  ;;  %vm452_vm8 = vcmp.eq.f32.partialorder %v451_v43, 8.507059e+37 }
 0x494   :  { %v1522_v21 = vpop.eup %1521 }
 0x495   :  { %v283_v22 = vmul.f32 %v1522_v21, %v278_v19  ;;  %v281_v23 = vpop.xlane.xlu2 %280  ;;  %vm288_vm14 = vweird.f32 %v1522_v21  ;;  %v347_v19 = vld [vmem:[#allocation2 + $0x18] sm:$0xff] }
 0x496   :  { %1525 = vrcp.f32 %v281_v23  ;;  %vm289_vm1 = vmor %vm287_vm15, %vm288_vm14  ;;  %v308_v45 = vand.u32 2147483648, %v281_v23  ;;  %v306_v48 = vand.u32 2147483647, %v281_v23  ;;  %vm302_vm9 = vweird.f32 %v281_v23 }
 0x497   :  { %v1524_v24 = vpop.eup %1523  ;;  %v284_v25 = vsub.f32 1.0, %v283_v22 }
 0x498   :  { %v443_v27 = vmul.f32 %v1524_v24, %v438_v20  ;;  %v1799_v28 = vpop.xlane.xlu1 %440  ;;  %vm448_vm2 = vweird.f32 %v1524_v24  ;;  %v309_v57 = vor.u32 1.1754944e-38, %v308_v45  ;;  %vm307_vm12 = vcmp.eq.f32.partialorder %v306_v48, 8.507059e+37  ;;  %v507_v20 = vld [vmem:[#allocation2 + $0x88] sm:$0xff]  ;;  %v594_v45 = vld [vmem:[#allocation2 + $0x20] sm:$0xff] }
 0x499   :  { %v285_v16 = vmul.f32 %v1522_v21, %v284_v25  ;;  %1527 = vrcp.f32 %v1799_v28  ;;  %vm1802_vm6 = vmor %vm447_vm5, %vm448_vm2  ;;  %v468_v62 = vand.u32 2147483648, %v1799_v28  ;;  %vm462_vm14 = vweird.f32 %v1799_v28 }
 0x49a   :  { %v444_v29 = vsub.f32 1.0, %v443_v27  ;;  %v466_v3 = vand.u32 2147483647, %v1799_v28 }
 0x49b   :  { %v286_v30 = vadd.f32 %v1522_v21, %v285_v16  ;;  %v469_v9 = vor.u32 1.1754944e-38, %v468_v62 }
 0x49c   :  { %v1526_v31 = vpop.eup %1525  ;;  %v445_v34 = vmul.f32 %v1524_v24, %v444_v29 }
 0x49d   :  { %v298_v35 = vmul.f32 %v1526_v31, %v281_v23  ;;  %v1483_v36 = vpop.permute.xlu2 %1482  ;;  %v290_v37 = vsel %vm289_vm1, %v1522_v21, %v286_v30  ;;  %vm303_vm7 = vweird.f32 %v1526_v31  ;;  %vm467_vm1 = vcmp.eq.f32.partialorder %v466_v3, 8.507059e+37 }
 0x49e   :  { %v446_v38 = vadd.f32 %v1524_v24, %v445_v34  ;;  %v1484_v40 = vunpack.i.l.bf16 %v1483_v36  ;;  %v295_v41 = vsel %vm292_vm4, %v294_v33, %v290_v37  ;;  %v1485_v47 = vunpack.i.h.bf16 %v1483_v36  ;;  %vm304_vm10 = vmor %vm302_vm9, %vm303_vm7 }
 0x49f   :  { %v1528_v42 = vpop.eup %1527  ;;  %v299_v11 = vsub.f32 1.0, %v298_v35  ;;  %v296_v50 = vmul.f32 %v1780_v63, %v295_v41 }
 0x4a0   :  { %v458_v46 = vmul.f32 %v1528_v42, %v1799_v28  ;;  %338 = vmatpush.msra.mxu3 %v1484_v40  ;;  %v450_v51 = vsel %vm1802_vm6, %v1524_v24, %v446_v38  ;;  %vm463_vm13 = vweird.f32 %v1528_v42 }
 0x4a1   :  { %v300_v49 = vmul.f32 %v1526_v31, %v299_v11  ;;  %v455_v60 = vsel %vm452_vm8, %v454_v53, %v450_v51  ;;  %vm464_vm15 = vmor %vm462_vm14, %vm463_vm13  ;;  %v596_v11 = vld [vmem:[#allocation2 + $0x90] sm:$0xff] }
 0x4a2   :  { %v459_v54 = vsub.f32 1.0, %v458_v46  ;;  %339 = vmatpush.msra.mxu3 %v1485_v47  ;;  %v456_v2 = vmul.f32 %v1784_v4, %v455_v60  ;;  %v508_v4 = vld [vmem:[#allocation2 + $0xc0] sm:$0xff] }
 0x4a3   :  { %v1488_v55 = vpop.permute.xlu0 %1487  ;;  %1430 = vmatmul.msk.f32.vlgmr.msra.gmra.mxu3 %vm228_vm11, %v296_v50  ;;  %v301_v56 = vadd.f32 %v1526_v31, %v300_v49  ;;  %529 = vmatpush.msrb.mxu0 %v508_v4  ;;  %v1495_v60 = vld [vmem:[%s1964_s4 + $0x4] ss:$0 sm:$0xff]  ;;  %v654_v4 = vld [vmem:[#allocation4 + $0x78] sm:$0xff] }
 0x4a4   :  { %v460_v58 = vmul.f32 %v1528_v42, %v459_v54  ;;  %v1489_v59 = vunpack.i.l.bf16 %v1488_v55  ;;  %369 = vmatpush.msrb.mxu3 %v348_v52  ;;  %v1490_v63 = vunpack.i.h.bf16 %v1488_v55  ;;  %671 = vmatpush.msra.mxu1 %v654_v4 }
 0x4a5   :  { %v305_v61 = vsel %vm304_vm10, %v1526_v31, %v301_v56  ;;  %530 = vmatpush.msrb.mxu0 %v507_v20  ;;  %v653_v20 = vld [vmem:[#allocation4 + $0x68] sm:$0xff] }
 0x4a6   :  { %498 = vmatpush.msrb.mxu2 %v1489_v59  ;;  %v310_v0 = vsel %vm307_vm12, %v309_v57, %v305_v61  ;;  %v461_v1 = vadd.f32 %v1528_v42, %v460_v58  ;;  %370 = vmatpush.msrb.mxu3 %v347_v19 }
 0x4a7   :  { %v311_v6 = vmul.f32 %v1788_v8, %v310_v0  ;;  %v1496_v0 = vld [vmem:[%s1964_s4 + $0x5] ss:$0 sm:$0xff]  ;;  %672 = vmatpush.msra.mxu1 %v653_v20  ;;  %v775_v20 = vld [vmem:[#allocation2 + $0x8] sm:$0xff] }
 0x4a8   :  { %499 = vmatpush.msrb.mxu2 %v1490_v63  ;;  %v465_v7 = vsel %vm464_vm15, %v1528_v42, %v461_v1 }
 0x4a9   :  { %1438 = vmatmul.msk.f32.vlgmr.msrb.gmra.mxu2 %vm228_vm11, %v456_v2  ;;  %v470_v15 = vsel %vm467_vm1, %v469_v9, %v465_v7 }
 0x4aa   :  { %v471_v17 = vmul.f32 %v1792_v13, %v470_v15  ;;  %v1494_v13 = vld [vmem:[%s1964_s4 + $0x3] ss:$0 sm:$0xff] }
 0x4ab   :  { %1431 = vmatmul.msk.f32.gmra.mxu3 %vm228_vm11, %v311_v6 }
 0x4b1   :  { %1439 = vmatmul.msk.f32.gmra.mxu2 %vm228_vm11, %v471_v17 }
 0x526   :  { %v341_v21 = vpop.f32.mrf.mxu3 }
 0x527   :  { %1432 = vmatmul.msk.f32.vlgmr.msrb.gmra.mxu3 %vm228_vm11, %v341_v21  ;;  %v652_v21 = vld [vmem:[#allocation4 + $0x58] sm:$0xff] }
 0x528   :  { %673 = vmatpush.msra.mxu1 %v652_v21 }
 0x52c   :  { %v501_v8 = vpop.f32.mrf.mxu2 }
 0x52d   :  { %1440 = vmatmul.msk.f32.vlgmr.msrb.gmra.mxu0 %vm228_vm11, %v501_v8  ;;  %v651_v8 = vld [vmem:[#allocation4 + $0x48] sm:$0xff] }
 0x52e   :  { %v344_v22 = vpop.f32.mrf.mxu3  ;;  %674 = vmatpush.msra.mxu1 %v651_v8 }
 0x52f   :  { %1433 = vmatmul.msk.f32.gmra.mxu3 %vm228_vm11, %v344_v22  ;;  %v650_v22 = vld [vmem:[#allocation4 + $0x38] sm:$0xff] }
 0x530   :  { %675 = vmatpush.msra.mxu1 %v650_v22 }
 0x534   :  { %v504_v23 = vpop.f32.mrf.mxu2 }
 0x535   :  { %1441 = vmatmul.msk.f32.gmra.mxu0 %vm228_vm11, %v504_v23  ;;  %v649_v23 = vld [vmem:[#allocation4 + $0x28] sm:$0xff] }
 0x536   :  { %676 = vmatpush.msra.mxu1 %v649_v23 }
 0x5aa   :  { %v372_v24 = vpop.f32.mrf.mxu3  ;;  %v532_v25 = vpop.f32.mrf.mxu0 }
 0x5ab   :  { %v379_v26 = vadd.f32 %v1494_v13, %v372_v24  ;;  %v647_v24 = vld [vmem:[#allocation4 + $0x8] sm:$0xff] }
 0x5ad   :  { %v538_v27 = vadd.f32 %v532_v25, %v379_v26  ;;  %v1497_v25 = vld [vmem:[%s1964_s4 + $0x6] ss:$0 sm:$0xff] }
 0x5af   :  { %v540_v28 = vadd.f32 %v538_v27, %v1740_v5 }
 0x5b1   :  { %v544_v16 = vsel %vm111_vm3, %v540_v28, 0.0 }
 0x5b2   :  { %545 = vadd.xlane.f32.xlu1 %v544_v16  ;;  %v375_v18 = vpop.f32.mrf.mxu3  ;;  %v535_v30 = vpop.f32.mrf.mxu0 }
 0x5b3   :  { %v380_v29 = vadd.f32 %v1494_v13, %v375_v18  ;;  %v648_v13 = vld [vmem:[#allocation4 + $0x18] sm:$0xff] }
 0x5b4   :  { %677 = vmatpush.msra.mxu1 %v648_v13 }
 0x5b5   :  { %v539_v31 = vadd.f32 %v535_v30, %v380_v29 }
 0x5b6   :  { %678 = vmatpush.msra.mxu1 %v647_v24 }
 0x5b7   :  { %v541_v33 = vadd.f32 %v539_v31, %v1744_v10  ;;  %v597_v10 = vld [vmem:[#allocation2 + $0xc8] sm:$0xff] }
 0x5b8   :  { %618 = vmatpush.msra.mxu3 %v597_v10 }
 0x5b9   :  { %v547_v34 = vsel %vm111_vm3, %v541_v33, 0.0 }
 0x5ba   :  { %548 = vadd.xlane.f32.xlu1 %v547_v34  ;;  %619 = vmatpush.msra.mxu3 %v596_v11 }
 0x5bc   :  { %620 = vmatpush.msra.mxu3 %v595_v44  ;;  %v1498_v44 = vld [vmem:[%s1964_s4 + $0x7] ss:$0 sm:$0xff] }
 0x5be   :  { %621 = vmatpush.msra.mxu3 %v594_v45 }
 0x625   :  { %v546_v35 = vpop.xlane.xlu1 %545 }
 0x626   :  { %v550_v36 = vmul.f32 %v546_v35, %v1726_v32 }
 0x628   :  { %v552_v37 = vsub.f32 %v540_v28, %v550_v36 }
 0x62a   :  { %v554_v38 = vmul.f32 %v552_v37, %v552_v37 }
 0x62c   :  { %v556_v39 = vsel %vm111_vm3, %v554_v38, 0.0 }
 0x62d   :  { %557 = vadd.xlane.f32.xlu1 %v556_v39  ;;  %v549_v5 = vpop.xlane.xlu1 %548 }
 0x62e   :  { %v551_v40 = vmul.f32 %v549_v5, %v1726_v32 }
 0x630   :  { %v553_v41 = vsub.f32 %v541_v33, %v551_v40 }
 0x632   :  { %v555_v42 = vmul.f32 %v553_v41, %v553_v41 }
 0x634   :  { %v559_v43 = vsel %vm111_vm3, %v555_v42, 0.0 }
 0x635   :  { %560 = vadd.xlane.f32.xlu0 %v559_v43 }
 0x6a0   :  { %v558_v46 = vpop.xlane.xlu1 %557 }
 0x6a1   :  { %v562_v47 = vmul.f32 %v558_v46, %v1726_v32 }
 0x6a3   :  { %v564_v48 = vadd.f32 1e-12, %v562_v47 }
 0x6a5   :  { %1529 = vrsqrt.f32 %v564_v48  ;;  %vm572_vm2 = vweird.f32 %v564_v48 }
 0x6a8   :  { %v561_v49 = vpop.xlane.xlu0 %560 }
 0x6a9   :  { %v563_v50 = vmul.f32 %v561_v49, %v1726_v32 }
 0x6ab   :  { %v1530_v51 = vpop.eup %1529  ;;  %v565_v52 = vadd.f32 1e-12, %v563_v50 }
 0x6ac   :  { %v567_v53 = vmul.f32 %v1530_v51, %v564_v48  ;;  %vm573_vm11 = vweird.f32 %v1530_v51 }
 0x6ad   :  { %1531 = vrsqrt.f32 %v565_v52  ;;  %vm574_vm4 = vmor %vm572_vm2, %vm573_vm11  ;;  %vm582_vm6 = vweird.f32 %v565_v52 }
 0x6ae   :  { %v568_v54 = vmul.f32 %v1530_v51, %v567_v53 }
 0x6b0   :  { %v569_v55 = vmul.f32 0.5, %v568_v54 }
 0x6b2   :  { %v570_v56 = vsub.f32 1.5, %v569_v55 }
 0x6b3   :  { %v1532_v57 = vpop.eup %1531 }
 0x6b4   :  { %v571_v58 = vmul.f32 %v1530_v51, %v570_v56  ;;  %v577_v59 = vmul.f32 %v1532_v57, %v565_v52  ;;  %vm583_vm5 = vweird.f32 %v1532_v57 }
 0x6b5   :  { %vm584_vm7 = vmor %vm582_vm6, %vm583_vm5 }
 0x6b6   :  { %v575_v61 = vsel %vm574_vm4, %v1530_v51, %v571_v58  ;;  %v578_v62 = vmul.f32 %v1532_v57, %v577_v59 }
 0x6b7   :  { %v586_v63 = vmul.f32 %v575_v61, %v552_v37 }
 0x6b8   :  { %v579_v1 = vmul.f32 0.5, %v578_v62 }
 0x6b9   :  { %v589_v2 = vmul.f32 %v1495_v60, %v586_v63  ;;  %v743_v63 = vld [vmem:[#allocation2 + $0xa8] sm:$0xff] }
 0x6ba   :  { %v580_v3 = vsub.f32 1.5, %v579_v1  ;;  %764 = vmatpush.msra.mxu2 %v743_v63  ;;  %v741_v1 = vld [vmem:[#allocation2 + $0x38] sm:$0xff] }
 0x6bb   :  { %v592_v6 = vadd.f32 %v1496_v0, %v589_v2  ;;  %v740_v2 = vld [vmem:[#allocation2] sm:$0xff] }
 0x6bc   :  { %v581_v7 = vmul.f32 %v1532_v57, %v580_v3 }
 0x6bd   :  { %1442 = vmatmul.msk.f32.vlgmr.msra.gmra.mxu3 %vm111_vm3, %v592_v6 }
 0x6be   :  { %v585_v9 = vsel %vm584_vm7, %v1532_v57, %v581_v7 }
 0x6bf   :  { %v587_v15 = vmul.f32 %v585_v9, %v553_v41  ;;  %v778_v9 = vld [vmem:[#allocation2 + $0xb0] sm:$0xff] }
 0x6c0   :  { %813 = vmatpush.msra.mxu0 %v778_v9  ;;  %879 = vmatpush.msrb.mxu3 %v778_v9 }
 0x6c1   :  { %v590_v17 = vmul.f32 %v1495_v60, %v587_v15  ;;  %v777_v15 = vld [vmem:[#allocation2 + $0x78] sm:$0xff]  ;;  %1019 = vmatpush.msrb.mxu1 %v778_v9 }
 0x6c2   :  { %814 = vmatpush.msra.mxu0 %v777_v15  ;;  %880 = vmatpush.msrb.mxu3 %v777_v15 }
 0x6c3   :  { %v593_v19 = vadd.f32 %v1496_v0, %v590_v17  ;;  %v742_v0 = vld [vmem:[#allocation2 + $0x70] sm:$0xff]  ;;  %v776_v17 = vld [vmem:[#allocation2 + $0x40] sm:$0xff]  ;;  %1020 = vmatpush.msrb.mxu1 %v777_v15 }
 0x6c4   :  { %765 = vmatpush.msra.mxu2 %v742_v0  ;;  %815 = vmatpush.msra.mxu0 %v776_v17 }
 0x6c5   :  { %1443 = vmatmul.msk.f32.gmra.mxu3 %vm111_vm3, %v593_v19  ;;  %1021 = vmatpush.msrb.mxu1 %v776_v17 }
 0x6c6   :  { %766 = vmatpush.msra.mxu2 %v741_v1  ;;  %881 = vmatpush.msrb.mxu3 %v776_v17 }
 0x6c7   :  { %816 = vmatpush.msra.mxu0 %v775_v20  ;;  %1022 = vmatpush.msrb.mxu1 %v775_v20 }
 0x6c8   :  { %767 = vmatpush.msra.mxu2 %v740_v2  ;;  %882 = vmatpush.msrb.mxu3 %v775_v20 }
 0x6c9   :  { %817 = vmatmul.f32.vlgmr.msra.gmra.mxu0 %v1664_v14  ;;  %v1499_v14 = vld [vmem:[%s1964_s4 + $0x8] ss:$0 sm:$0xff] }
 0x6ca   :  { %1093 = vmatpush.msrb.mxu2 %v778_v9  ;;  %949 = vmatpush.msrb.mxu0 %v778_v9 }
 0x6cb   :  { %1162 = vmatpush.msra.mxu3 %v778_v9 }
 0x6cc   :  { %1094 = vmatpush.msrb.mxu2 %v777_v15  ;;  %950 = vmatpush.msrb.mxu0 %v777_v15 }
 0x6cd   :  { %1163 = vmatpush.msra.mxu3 %v777_v15 }
 0x6ce   :  { %1095 = vmatpush.msrb.mxu2 %v776_v17  ;;  %951 = vmatpush.msrb.mxu0 %v776_v17 }
 0x6cf   :  { %1164 = vmatpush.msra.mxu3 %v776_v17 }
 0x6d0   :  { %1096 = vmatpush.msrb.mxu2 %v775_v20  ;;  %952 = vmatpush.msrb.mxu0 %v775_v20 }
 0x6d1   :  { %1165 = vmatpush.msra.mxu3 %v775_v20 }
 0x6d2   :  { %1232 = vmatpush.msra.mxu0 %v778_v9 }
 0x6d4   :  { %1233 = vmatpush.msra.mxu0 %v777_v15 }
 0x6d6   :  { %1234 = vmatpush.msra.mxu0 %v776_v17 }
 0x6d8   :  { %1235 = vmatpush.msra.mxu0 %v775_v20 }
 0x740   :  { %v623_v26 = vpop.f32.mrf.mxu3 }
 0x741   :  { %v624_v27 = vadd.f32 %v1497_v25, %v623_v26 }
 0x743   :  { %v629_v28 = vmul.f32 %v624_v27, %v624_v27 }
 0x745   :  { %v631_v16 = vmul.f32 %v629_v28, %v624_v27 }
 0x747   :  { %v633_v18 = vmul.f32 0.044715, %v631_v16 }
 0x748   :  { %v626_v29 = vpop.f32.mrf.mxu3 }
 0x749   :  { %v635_v30 = vadd.f32 %v633_v18, %v624_v27  ;;  %v627_v31 = vadd.f32 %v1497_v25, %v626_v29  ;;  %v1500_v18 = vld [vmem:[%s1964_s4 + $0x9] ss:$0 sm:$0xff] }
 0x74b   :  { %v637_v33 = vmul.f32 0.7978846, %v635_v30  ;;  %v630_v34 = vmul.f32 %v627_v31, %v627_v31 }
 0x74d   :  { %1533 = vtanh.f32 %v637_v33  ;;  %v632_v35 = vmul.f32 %v630_v34, %v627_v31 }
 0x74f   :  { %v634_v36 = vmul.f32 0.044715, %v632_v35 }
 0x751   :  { %v636_v37 = vadd.f32 %v634_v36, %v627_v31 }
 0x753   :  { %v1534_v38 = vpop.eup %1533  ;;  %v638_v39 = vmul.f32 0.7978846, %v636_v37 }
 0x754   :  { %v641_v5 = vadd.f32 1.0, %v1534_v38 }
 0x755   :  { %1535 = vtanh.f32 %v638_v39 }
 0x756   :  { %v643_v40 = vmul.f32 0.5, %v641_v5  ;;  %v1501_v5 = vld [vmem:[%s1964_s4 + $0xa] ss:$0 sm:$0xff] }
 0x758   :  { %v645_v41 = vmul.f32 %v643_v40, %v624_v27  ;;  %v783_v40 = vand.u32 31, %v1716_v12 }
 0x75a   :  { %1444 = vmatmul.msk.f32.vlgmr.msra.gmra.mxu1 %vm79_vm0, %v645_v41  ;;  %vm791_vm14 = vcmp.lt.s32.totalorder %v783_v40, 16 }
 0x75b   :  { %v1536_v42 = vpop.eup %1535  ;;  %1302 = vmatpush.msra.mxu1 %v778_v9 }
 0x75c   :  { %v642_v43 = vadd.f32 1.0, %v1536_v42 }
 0x75d   :  { %1303 = vmatpush.msra.mxu1 %v777_v15 }
 0x75e   :  { %v644_v10 = vmul.f32 0.5, %v642_v43 }
 0x75f   :  { %1304 = vmatpush.msra.mxu1 %v776_v17 }
 0x760   :  { %v646_v11 = vmul.f32 %v644_v10, %v627_v31 }
 0x761   :  { %1305 = vmatpush.msra.mxu1 %v775_v20 }
 0x762   :  { %1445 = vmatmul.msk.f32.gmra.mxu1 %vm79_vm0, %v646_v11 }
 0x7d7   :  { %v680_v45 = vpop.f32.mrf.mxu1 }
 0x7d8   :  { %v681_v46 = vadd.f32 %v1498_v44, %v680_v45  ;;  %v818_v45 = vpop.f32.mrf.mxu0 }
 0x7da   :  { %v686_v47 = vadd.f32 %v681_v46, %v592_v6 }
 0x7dc   :  { %v690_v48 = vsel %vm111_vm3, %v686_v47, 0.0 }
 0x7dd   :  { %691 = vadd.xlane.f32.xlu2 %v690_v48 }
 0x7df   :  { %v683_v49 = vpop.f32.mrf.mxu1 }
 0x7e0   :  { %v684_v50 = vadd.f32 %v1498_v44, %v683_v49 }
 0x7e2   :  { %v687_v51 = vadd.f32 %v684_v50, %v593_v19 }
 0x7e4   :  { %v693_v52 = vsel %vm111_vm3, %v687_v51, 0.0 }
 0x7e5   :  { %694 = vadd.xlane.f32.xlu1 %v693_v52 }
 0x850   :  { %v692_v53 = vpop.xlane.xlu2 %691 }
 0x851   :  { %v696_v54 = vmul.f32 %v692_v53, %v1726_v32 }
 0x853   :  { %v1856_v55 = vsub.f32 %v686_v47, %v696_v54 }
 0x855   :  { %v700_v56 = vmul.f32 %v1856_v55, %v1856_v55 }
 0x857   :  { %v702_v57 = vsel %vm111_vm3, %v700_v56, 0.0 }
 0x858   :  { %v695_v58 = vpop.xlane.xlu1 %694  ;;  %703 = vadd.xlane.f32.xlu1 %v702_v57 }
 0x859   :  { %v697_v59 = vmul.f32 %v695_v58, %v1726_v32 }
 0x85b   :  { %v1862_v60 = vsub.f32 %v687_v51, %v697_v59 }
 0x85d   :  { %v701_v61 = vmul.f32 %v1862_v60, %v1862_v60 }
 0x85f   :  { %v705_v62 = vsel %vm111_vm3, %v701_v61, 0.0 }
 0x860   :  { %706 = vadd.xlane.f32.xlu1 %v705_v62 }
 0x8cb   :  { %v704_v3 = vpop.xlane.xlu1 %703 }
 0x8cc   :  { %v708_v6 = vmul.f32 %v704_v3, %v1726_v32 }
 0x8ce   :  { %v710_v7 = vadd.f32 1e-12, %v708_v6 }
 0x8d0   :  { %1537 = vrsqrt.f32 %v710_v7  ;;  %vm718_vm8 = vweird.f32 %v710_v7 }
 0x8d3   :  { %v707_v19 = vpop.xlane.xlu1 %706 }
 0x8d4   :  { %v709_v4 = vmul.f32 %v707_v19, %v1726_v32 }
 0x8d6   :  { %v1538_v21 = vpop.eup %1537  ;;  %v711_v8 = vadd.f32 1e-12, %v709_v4 }
 0x8d7   :  { %v713_v22 = vmul.f32 %v1538_v21, %v710_v7  ;;  %vm719_vm0 = vweird.f32 %v1538_v21 }
 0x8d8   :  { %1539 = vrsqrt.f32 %v711_v8  ;;  %vm720_vm9 = vmor %vm718_vm8, %vm719_vm0  ;;  %vm728_vm12 = vweird.f32 %v711_v8 }
 0x8d9   :  { %v714_v23 = vmul.f32 %v1538_v21, %v713_v22 }
 0x8db   :  { %v715_v32 = vmul.f32 0.5, %v714_v23 }
 0x8dd   :  { %v716_v13 = vsub.f32 1.5, %v715_v32 }
 0x8de   :  { %v1540_v24 = vpop.eup %1539 }
 0x8df   :  { %v717_v25 = vmul.f32 %v1538_v21, %v716_v13  ;;  %v723_v26 = vmul.f32 %v1540_v24, %v711_v8  ;;  %vm729_vm10 = vweird.f32 %v1540_v24 }
 0x8e0   :  { %vm730_vm13 = vmor %vm728_vm12, %vm729_vm10 }
 0x8e1   :  { %v721_v27 = vsel %vm720_vm9, %v1538_v21, %v717_v25  ;;  %v724_v28 = vmul.f32 %v1540_v24, %v723_v26 }
 0x8e2   :  { %v732_v16 = vmul.f32 %v721_v27, %v1856_v55 }
 0x8e3   :  { %v725_v29 = vmul.f32 0.5, %v724_v28 }
 0x8e4   :  { %v735_v30 = vmul.f32 %v1499_v14, %v732_v16 }
 0x8e5   :  { %v726_v31 = vsub.f32 1.5, %v725_v29 }
 0x8e6   :  { %v738_v33 = vadd.f32 %v1500_v18, %v735_v30 }
 0x8e7   :  { %v727_v34 = vmul.f32 %v1540_v24, %v726_v31 }
 0x8e8   :  { %1446 = vmatmul.msk.f32.vlgmr.msra.gmra.mxu2 %vm111_vm3, %v738_v33 }
 0x8e9   :  { %v731_v35 = vsel %vm730_vm13, %v1540_v24, %v727_v34 }
 0x8ea   :  { %v733_v36 = vmul.f32 %v731_v35, %v1862_v60 }
 0x8ec   :  { %v736_v37 = vmul.f32 %v1499_v14, %v733_v36 }
 0x8ee   :  { %v739_v38 = vadd.f32 %v1500_v18, %v736_v37 }
 0x8f0   :  { %1447 = vmatmul.msk.f32.gmra.mxu2 %vm111_vm3, %v739_v38 }
 0x96b   :  { %v769_v39 = vpop.f32.mrf.mxu2 }
 0x96c   :  { %v770_v41 = vadd.f32 %v1501_v5, %v769_v39 }
 0x96e   :  { %v1072_v10 = vrot.slane %v770_v41, 6  ;;  %v1142_v11 = vrot.slane %v770_v41, 2 }
 0x973   :  { %v772_v42 = vpop.f32.mrf.mxu2 }
 0x974   :  { %v773_v43 = vadd.f32 %v1501_v5, %v772_v42 }
 0x976   :  { %v795_v44 = vrot.slane %v773_v43, 6  ;;  %v859_v46 = vrot.slane %v773_v43, 2  ;;  %v1884_v47 = vsel %vm791_vm14, %v773_v43, %v1072_v10  ;;  %v1886_v48 = vsel %vm791_vm14, %v773_v43, %v1142_v11 }
 0x978   :  { %v1888_v49 = vsel %vm791_vm14, %v770_v41, %v795_v44  ;;  %v1890_v50 = vsel %vm791_vm14, %v770_v41, %v859_v46 }
 0x979   :  { %v821_v51 = vadd.f32 %v818_v45, %v1888_v49 }
 0x97b   :  { %1541 = vtanh.f32 %v821_v51  ;;  %v1448_v52 = vmul.f32 -1.442695, %v821_v51 }
 0x97d   :  { %1543 = vpow2.f32 %v1448_v52 }
 0x981   :  { %v1542_v12 = vpop.eup %1541 }
 0x982   :  { %844 = vrot.lane.b32.xlu1 %v1542_v12, %s1672_s0 }
 0x983   :  { %v1544_v53 = vpop.eup %1543 }
 0x984   :  { %v825_v54 = vadd.f32 1.0, %v1544_v53 }
 0x986   :  { %1545 = vrcp.f32 %v825_v54  ;;  %v837_v60 = vand.u32 2147483648, %v825_v54  ;;  %vm831_vm1 = vweird.f32 %v825_v54  ;;  %v835_v61 = vand.u32 2147483647, %v825_v54 }
 0x988   :  { %v838_v63 = vor.u32 1.1754944e-38, %v837_v60  ;;  %vm836_vm2 = vcmp.eq.f32.partialorder %v835_v61, 8.507059e+37 }
 0x98c   :  { %v1546_v55 = vpop.eup %1545 }
 0x98d   :  { %v827_v56 = vmul.f32 %v1546_v55, %v825_v54  ;;  %vm832_vm15 = vweird.f32 %v1546_v55 }
 0x98e   :  { %vm833_vm11 = vmor %vm831_vm1, %vm832_vm15 }
 0x98f   :  { %v828_v57 = vsub.f32 1.0, %v827_v56 }
 0x991   :  { %v829_v58 = vmul.f32 %v1546_v55, %v828_v57 }
 0x993   :  { %v830_v59 = vadd.f32 %v1546_v55, %v829_v58 }
 0x995   :  { %v834_v62 = vsel %vm833_vm11, %v1546_v55, %v830_v59 }
 0x996   :  { %v839_v1 = vsel %vm836_vm2, %v838_v63, %v834_v62 }
 0x997   :  { %v842_v3 = vmul.f32 0.0, %v839_v1 }
 0x9f4   :  { %v845_v0 = vpop.permute.xlu1 %844 }
 0x9f5   :  { %v847_v2 = vmul.f32 %v845_v0, %v839_v1 }
 0x9f7   :  { %849 = vrot.lane.b32.xlu0 %v847_v2, %s1672_s0 }
 0xa69   :  { %v850_v6 = vpop.permute.xlu0 %849 }
 0xa6a   :  { %v852_v7 = vadd.f32 %v850_v6, %v842_v3 }
 0xa6c   :  { %1547 = vtanh.f32 %v852_v7  ;;  %v912_v33 = vrot.slane %v852_v7, 6 }
 0xa72   :  { %v1548_v9 = vpop.eup %1547 }
 0xa73   :  { %855 = vrot.lane.b32.xlu2 %v1548_v9, %s1672_s0 }
 0xacd   :  { %v856_v15 = vpop.permute.xlu2 %855 }
 0xace   :  { %v858_v17 = vmul.f32 %v856_v15, %v839_v1 }
 0xad0   :  { %863 = vrot.lane.b32.xlu1 %v858_v17, %s1671_s19 }
 0xb42   :  { %v864_v19 = vpop.permute.xlu1 %863 }
 0xb43   :  { %1449 = vmatmul.msk.f32.vlgmr.msrb.gmra.mxu3 %vm111_vm3, %v864_v19 }
 0xbc6   :  { %v884_v4 = vpop.f32.mrf.mxu3 }
 0xbc7   :  { %v888_v20 = vrot.slane %v884_v4, 6 }
 0xbc9   :  { %v890_v21 = vadd.f32 %v888_v20, %v1890_v50 }
 0xbcb   :  { %1549 = vtanh.f32 %v890_v21  ;;  %v1450_v22 = vmul.f32 -1.442695, %v890_v21 }
 0xbcd   :  { %1551 = vpow2.f32 %v1450_v22 }
 0xbd1   :  { %v1550_v8 = vpop.eup %1549 }
 0xbd2   :  { %916 = vrot.lane.b32.xlu0 %v1550_v8, %s1672_s0 }
 0xbd3   :  { %v1552_v23 = vpop.eup %1551 }
 0xbd4   :  { %v894_v32 = vadd.f32 1.0, %v1552_v23 }
 0xbd6   :  { %1553 = vrcp.f32 %v894_v32  ;;  %v906_v27 = vand.u32 2147483648, %v894_v32  ;;  %vm900_vm5 = vweird.f32 %v894_v32  ;;  %v904_v28 = vand.u32 2147483647, %v894_v32 }
 0xbd8   :  { %v907_v18 = vor.u32 1.1754944e-38, %v906_v27  ;;  %vm905_vm7 = vcmp.eq.f32.partialorder %v904_v28, 8.507059e+37 }
 0xbdc   :  { %v1554_v13 = vpop.eup %1553 }
 0xbdd   :  { %v896_v24 = vmul.f32 %v1554_v13, %v894_v32  ;;  %vm901_vm4 = vweird.f32 %v1554_v13 }
 0xbde   :  { %vm902_vm6 = vmor %vm900_vm5, %vm901_vm4 }
 0xbdf   :  { %v897_v25 = vsub.f32 1.0, %v896_v24 }
 0xbe1   :  { %v898_v26 = vmul.f32 %v1554_v13, %v897_v25 }
 0xbe3   :  { %v899_v14 = vadd.f32 %v1554_v13, %v898_v26 }
 0xbe5   :  { %v903_v16 = vsel %vm902_vm6, %v1554_v13, %v899_v14 }
 0xbe6   :  { %v908_v30 = vsel %vm905_vm7, %v907_v18, %v903_v16 }
 0xbe7   :  { %v914_v34 = vmul.f32 %v912_v33, %v908_v30 }
 0xc44   :  { %v917_v29 = vpop.permute.xlu0 %916 }
 0xc45   :  { %v919_v31 = vmul.f32 %v917_v29, %v908_v30 }
 0xc47   :  { %921 = vrot.lane.b32.xlu1 %v919_v31, %s1672_s0 }
 0xcb9   :  { %v922_v35 = vpop.permute.xlu1 %921 }
 0xcba   :  { %v924_v36 = vadd.f32 %v922_v35, %v914_v34 }
 0xcbc   :  { %1555 = vtanh.f32 %v924_v36  ;;  %v982_v60 = vrot.slane %v924_v36, 6 }
 0xcc2   :  { %v1556_v37 = vpop.eup %1555 }
 0xcc3   :  { %927 = vrot.lane.b32.xlu2 %v1556_v37, %s1672_s0 }
 0xd1d   :  { %v928_v38 = vpop.permute.xlu2 %927 }
 0xd1e   :  { %v930_v39 = vmul.f32 %v928_v38, %v908_v30 }
 0xd20   :  { %v932_v5 = vrot.slane %v930_v39, 2 }
 0xd22   :  { %933 = vrot.lane.b32.xlu0 %v932_v5, %s1671_s19 }
 0xd94   :  { %v934_v40 = vpop.permute.xlu0 %933 }
 0xd95   :  { %1451 = vmatmul.msk.f32.vlgmr.msrb.gmra.mxu0 %vm111_vm3, %v934_v40 }
 0xe12   :  { %v954_v41 = vpop.f32.mrf.mxu0 }
 0xe13   :  { %v958_v42 = vrot.slane %v954_v41, 4 }
 0xe15   :  { %v960_v43 = vadd.f32 %v958_v42, %v1888_v49 }
 0xe17   :  { %1557 = vtanh.f32 %v960_v43  ;;  %v1452_v11 = vmul.f32 -1.442695, %v960_v43 }
 0xe19   :  { %1559 = vpow2.f32 %v1452_v11 }
 0xe1d   :  { %v1558_v10 = vpop.eup %1557 }
 0xe1e   :  { %986 = vrot.lane.b32.xlu1 %v1558_v10, %s1672_s0 }
 0xe1f   :  { %v1560_v44 = vpop.eup %1559 }
 0xe20   :  { %v964_v45 = vadd.f32 1.0, %v1560_v44 }
 0xe22   :  { %1561 = vrcp.f32 %v964_v45  ;;  %v976_v54 = vand.u32 2147483648, %v964_v45  ;;  %vm970_vm8 = vweird.f32 %v964_v45  ;;  %v974_v55 = vand.u32 2147483647, %v964_v45 }
 0xe24   :  { %v977_v56 = vor.u32 1.1754944e-38, %v976_v54  ;;  %vm975_vm10 = vcmp.eq.f32.partialorder %v974_v55, 8.507059e+37 }
 0xe28   :  { %v1562_v46 = vpop.eup %1561 }
 0xe29   :  { %v966_v51 = vmul.f32 %v1562_v46, %v964_v45  ;;  %vm971_vm0 = vweird.f32 %v1562_v46 }
 0xe2a   :  { %vm972_vm9 = vmor %vm970_vm8, %vm971_vm0 }
 0xe2b   :  { %v967_v12 = vsub.f32 1.0, %v966_v51 }
 0xe2d   :  { %v968_v52 = vmul.f32 %v1562_v46, %v967_v12 }
 0xe2f   :  { %v969_v53 = vadd.f32 %v1562_v46, %v968_v52 }
 0xe31   :  { %v973_v49 = vsel %vm972_vm9, %v1562_v46, %v969_v53 }
 0xe32   :  { %v978_v58 = vsel %vm975_vm10, %v977_v56, %v973_v49 }
 0xe33   :  { %v984_v61 = vmul.f32 %v982_v60, %v978_v58 }
 0xe90   :  { %v987_v57 = vpop.permute.xlu1 %986 }
 0xe91   :  { %v989_v59 = vmul.f32 %v987_v57, %v978_v58 }
 0xe93   :  { %991 = vrot.lane.b32.xlu2 %v989_v59, %s1672_s0 }
 0xeed   :  { %v992_v62 = vpop.permute.xlu2 %991 }
 0xeee   :  { %v994_v63 = vadd.f32 %v992_v62, %v984_v61 }
 0xef0   :  { %1563 = vtanh.f32 %v994_v63  ;;  %v1052_v28 = vrot.slane %v994_v63, 6 }
 0xef6   :  { %v1564_v0 = vpop.eup %1563 }
 0xef7   :  { %997 = vrot.lane.b32.xlu0 %v1564_v0, %s1672_s0 }
 0xf69   :  { %v998_v1 = vpop.permute.xlu0 %997 }
 0xf6a   :  { %v1000_v2 = vmul.f32 %v998_v1, %v978_v58 }
 0xf6c   :  { %v1002_v3 = vrot.slane %v1000_v2, 4 }
 0xf6e   :  { %1003 = vrot.lane.b32.xlu1 %v1002_v3, %s1671_s19 }
 0xfe0   :  { %v1004_v6 = vpop.permute.xlu1 %1003 }
 0xfe1   :  { %1453 = vmatmul.msk.f32.vlgmr.msrb.gmra.mxu1 %vm111_vm3, %v1004_v6 }
0x105e   :  { %v1024_v7 = vpop.f32.mrf.mxu1 }
0x105f   :  { %v1028_v9 = vrot.slane %v1024_v7, 2 }
0x1061   :  { %v1030_v15 = vadd.f32 %v1028_v9, %v1890_v50 }
0x1063   :  { %1565 = vtanh.f32 %v1030_v15  ;;  %v1454_v19 = vmul.f32 -1.442695, %v1030_v15 }
0x1065   :  { %1567 = vpow2.f32 %v1454_v19 }
0x1069   :  { %v1566_v17 = vpop.eup %1565 }
0x106a   :  { %1056 = vrot.lane.b32.xlu2 %v1566_v17, %s1672_s0 }
0x106b   :  { %v1568_v4 = vpop.eup %1567 }
0x106c   :  { %v1034_v20 = vadd.f32 1.0, %v1568_v4 }
0x106e   :  { %1569 = vrcp.f32 %v1034_v20  ;;  %v1046_v13 = vand.u32 2147483648, %v1034_v20  ;;  %vm1040_vm13 = vweird.f32 %v1034_v20  ;;  %v1044_v24 = vand.u32 2147483647, %v1034_v20 }
0x1070   :  { %v1047_v25 = vor.u32 1.1754944e-38, %v1046_v13  ;;  %vm1045_vm15 = vcmp.eq.f32.partialorder %v1044_v24, 8.507059e+37 }
0x1074   :  { %v1570_v21 = vpop.eup %1569 }
0x1075   :  { %v1036_v8 = vmul.f32 %v1570_v21, %v1034_v20  ;;  %vm1041_vm12 = vweird.f32 %v1570_v21 }
0x1076   :  { %vm1042_vm14 = vmor %vm1040_vm13, %vm1041_vm12 }
0x1077   :  { %v1037_v22 = vsub.f32 1.0, %v1036_v8 }
0x1079   :  { %v1038_v23 = vmul.f32 %v1570_v21, %v1037_v22 }
0x107b   :  { %v1039_v32 = vadd.f32 %v1570_v21, %v1038_v23 }
0x107d   :  { %v1043_v50 = vsel %vm1042_vm14, %v1570_v21, %v1039_v32 }
0x107e   :  { %v1048_v14 = vsel %vm1045_vm15, %v1047_v25, %v1043_v50 }
0x107f   :  { %v1054_v16 = vmul.f32 %v1052_v28, %v1048_v14 }
0x10c4   :  { %v1057_v26 = vpop.permute.xlu2 %1056 }
0x10c5   :  { %v1059_v27 = vmul.f32 %v1057_v26, %v1048_v14 }
0x10c7   :  { %1061 = vrot.lane.b32.xlu0 %v1059_v27, %s1672_s0 }
0x1139   :  { %v1062_v18 = vpop.permute.xlu0 %1061 }
0x113a   :  { %v1064_v29 = vadd.f32 %v1062_v18, %v1054_v16 }
0x113c   :  { %1571 = vtanh.f32 %v1064_v29  ;;  %v1123_v54 = vrot.slane %v1064_v29, 6 }
0x1142   :  { %v1572_v30 = vpop.eup %1571 }
0x1143   :  { %1067 = vrot.lane.b32.xlu1 %v1572_v30, %s1672_s0 }
0x11b5   :  { %v1068_v31 = vpop.permute.xlu1 %1067 }
0x11b6   :  { %v1070_v33 = vmul.f32 %v1068_v31, %v1048_v14 }
0x11b8   :  { %v1076_v34 = vrot.slane %v1070_v33, 6 }
0x11ba   :  { %1077 = vrot.lane.b32.xlu2 %v1076_v34, %s1671_s19 }
0x1214   :  { %v1078_v35 = vpop.permute.xlu2 %1077 }
0x1215   :  { %1455 = vmatmul.msk.f32.vlgmr.msrb.gmra.mxu2 %vm111_vm3, %v1078_v35 }
0x1298   :  { %v1098_v36 = vpop.f32.mrf.mxu2 }
0x1299   :  { %v1101_v37 = vadd.f32 %v1098_v36, %v1884_v47 }
0x129b   :  { %1573 = vtanh.f32 %v1101_v37  ;;  %v1456_v39 = vmul.f32 -1.442695, %v1101_v37 }
0x129d   :  { %1575 = vpow2.f32 %v1456_v39 }
0x12a1   :  { %v1574_v38 = vpop.eup %1573 }
0x12a2   :  { %1127 = vrot.lane.b32.xlu0 %v1574_v38, %s1672_s0 }
0x12a3   :  { %v1576_v5 = vpop.eup %1575 }
0x12a4   :  { %v1105_v40 = vadd.f32 1.0, %v1576_v5 }
0x12a6   :  { %1577 = vrcp.f32 %v1105_v40  ;;  %v1117_v44 = vand.u32 2147483648, %v1105_v40  ;;  %vm1111_vm11 = vweird.f32 %v1105_v40  ;;  %v1115_v45 = vand.u32 2147483647, %v1105_v40 }
0x12a8   :  { %v1118_v51 = vor.u32 1.1754944e-38, %v1117_v44  ;;  %vm1116_vm4 = vcmp.eq.f32.partialorder %v1115_v45, 8.507059e+37 }
0x12ac   :  { %v1578_v41 = vpop.eup %1577 }
0x12ad   :  { %v1107_v42 = vmul.f32 %v1578_v41, %v1105_v40  ;;  %vm1112_vm1 = vweird.f32 %v1578_v41 }
0x12ae   :  { %vm1113_vm2 = vmor %vm1111_vm11, %vm1112_vm1  ;;  %vm1404_vm11 = vcmask 123904  }
0x12af   :  { %v1108_v43 = vsub.f32 1.0, %v1107_v42 }
0x12b1   :  { %v1109_v10 = vmul.f32 %v1578_v41, %v1108_v43 }
0x12b3   :  { %v1110_v11 = vadd.f32 %v1578_v41, %v1109_v10 }
0x12b5   :  { %v1114_v46 = vsel %vm1113_vm2, %v1578_v41, %v1110_v11 }
0x12b6   :  { %v1119_v52 = vsel %vm1116_vm4, %v1118_v51, %v1114_v46 }
0x12b7   :  { %v1125_v55 = vmul.f32 %v1123_v54, %v1119_v52 }
0x1314   :  { %v1128_v12 = vpop.permute.xlu0 %1127 }
0x1315   :  { %v1130_v53 = vmul.f32 %v1128_v12, %v1119_v52 }
0x1317   :  { %1132 = vrot.lane.b32.xlu1 %v1130_v53, %s1672_s0 }
0x1389   :  { %v1133_v49 = vpop.permute.xlu1 %1132 }
0x138a   :  { %v1135_v56 = vadd.f32 %v1133_v49, %v1125_v55 }
0x138c   :  { %1579 = vtanh.f32 %v1135_v56  ;;  %v1195_v32 = vrot.slane %v1135_v56, 6 }
0x1392   :  { %v1580_v57 = vpop.eup %1579 }
0x1393   :  { %1138 = vrot.lane.b32.xlu2 %v1580_v57, %s1672_s0 }
0x13ed   :  { %v1139_v58 = vpop.permute.xlu2 %1138 }
0x13ee   :  { %v1141_v59 = vmul.f32 %v1139_v58, %v1119_v52 }
0x13f0   :  { %1146 = vrot.lane.b32.xlu0 %v1141_v59, %s1671_s19 }
0x1462   :  { %v1147_v60 = vpop.permute.xlu0 %1146 }
0x1463   :  { %1457 = vmatmul.msk.f32.vlgmr.msra.gmra.mxu3 %vm111_vm3, %v1147_v60 }
0x14e6   :  { %v1167_v61 = vpop.f32.mrf.mxu3 }
0x14e7   :  { %v1171_v62 = vrot.slane %v1167_v61, 6  ;;  %v1502_v61 = vld [vmem:[%s1964_s4 + $0xb] ss:$0 sm:$0xff] }
0x14e9   :  { %v1173_v63 = vadd.f32 %v1171_v62, %v1886_v48 }
0x14eb   :  { %1581 = vtanh.f32 %v1173_v63  ;;  %v1458_v1 = vmul.f32 -1.442695, %v1173_v63 }
0x14ed   :  { %1583 = vpow2.f32 %v1458_v1 }
0x14f1   :  { %v1582_v0 = vpop.eup %1581 }
0x14f2   :  { %1199 = vrot.lane.b32.xlu1 %v1582_v0, %s1672_s0 }
0x14f3   :  { %v1584_v2 = vpop.eup %1583 }
0x14f4   :  { %v1177_v3 = vadd.f32 1.0, %v1584_v2 }
0x14f6   :  { %1585 = vrcp.f32 %v1177_v3  ;;  %v1189_v19 = vand.u32 2147483648, %v1177_v3  ;;  %vm1183_vm6 = vweird.f32 %v1177_v3  ;;  %v1187_v4 = vand.u32 2147483647, %v1177_v3 }
0x14f8   :  { %v1190_v21 = vor.u32 1.1754944e-38, %v1189_v19  ;;  %vm1188_vm0 = vcmp.eq.f32.partialorder %v1187_v4, 8.507059e+37  ;;  %v1503_v19 = vld [vmem:[%s1964_s4 + $0xc] ss:$0 sm:$0xff] }
0x14fc   :  { %v1586_v6 = vpop.eup %1585 }
0x14fd   :  { %v1179_v7 = vmul.f32 %v1586_v6, %v1177_v3  ;;  %vm1184_vm5 = vweird.f32 %v1586_v6 }
0x14fe   :  { %vm1185_vm7 = vmor %vm1183_vm6, %vm1184_vm5 }
0x14ff   :  { %v1180_v9 = vsub.f32 1.0, %v1179_v7 }
0x1501   :  { %v1181_v15 = vmul.f32 %v1586_v6, %v1180_v9 }
0x1503   :  { %v1182_v17 = vadd.f32 %v1586_v6, %v1181_v15 }
0x1505   :  { %v1186_v20 = vsel %vm1185_vm7, %v1586_v6, %v1182_v17 }
0x1506   :  { %v1191_v22 = vsel %vm1188_vm0, %v1190_v21, %v1186_v20 }
0x1507   :  { %v1197_v13 = vmul.f32 %v1195_v32, %v1191_v22  ;;  %v1370_v32 = vld [vmem:[#allocation2 + $0x98] sm:$0xff] }
0x1564   :  { %v1200_v8 = vpop.permute.xlu1 %1199 }
0x1565   :  { %v1202_v23 = vmul.f32 %v1200_v8, %v1191_v22 }
0x1567   :  { %1204 = vrot.lane.b32.xlu2 %v1202_v23, %s1672_s0  ;;  %v1371_v23 = vld [vmem:[#allocation2 + $0xd0] sm:$0xff] }
0x1568   :  { %1392 = vmatpush.msra.mxu2 %v1371_v23 }
0x156a   :  { %1393 = vmatpush.msra.mxu2 %v1370_v32 }
0x15c1   :  { %v1205_v24 = vpop.permute.xlu2 %1204 }
0x15c2   :  { %v1207_v50 = vadd.f32 %v1205_v24, %v1197_v13  ;;  %v1369_v13 = vld [vmem:[#allocation2 + $0x60] sm:$0xff]  ;;  %v1368_v24 = vld [vmem:[#allocation2 + $0x28] sm:$0xff] }
0x15c3   :  { %1394 = vmatpush.msra.mxu2 %v1369_v13 }
0x15c4   :  { %1587 = vtanh.f32 %v1207_v50  ;;  %v1265_v11 = vrot.slane %v1207_v50, 6 }
0x15c5   :  { %1395 = vmatpush.msra.mxu2 %v1368_v24 }
0x15ca   :  { %v1588_v25 = vpop.eup %1587 }
0x15cb   :  { %1210 = vrot.lane.b32.xlu0 %v1588_v25, %s1672_s0 }
0x163d   :  { %v1211_v26 = vpop.permute.xlu0 %1210 }
0x163e   :  { %v1213_v14 = vmul.f32 %v1211_v26, %v1191_v22 }
0x1640   :  { %v1215_v27 = vrot.slane %v1213_v14, 2 }
0x1642   :  { %1216 = vrot.lane.b32.xlu1 %v1215_v27, %s1671_s19 }
0x16b4   :  { %v1217_v28 = vpop.permute.xlu1 %1216 }
0x16b5   :  { %1459 = vmatmul.msk.f32.vlgmr.msra.gmra.mxu0 %vm111_vm3, %v1217_v28 }
0x1732   :  { %v1237_v16 = vpop.f32.mrf.mxu0 }
0x1733   :  { %v1241_v18 = vrot.slane %v1237_v16, 4 }
0x1735   :  { %v1243_v29 = vadd.f32 %v1241_v18, %v1884_v47 }
0x1737   :  { %1589 = vtanh.f32 %v1243_v29  ;;  %v1460_v31 = vmul.f32 -1.442695, %v1243_v29  ;;  %v1504_v29 = vld [vmem:[%s1964_s4 + $0xd] ss:$0 sm:$0xff] }
0x1739   :  { %1591 = vpow2.f32 %v1460_v31 }
0x173d   :  { %v1590_v30 = vpop.eup %1589 }
0x173e   :  { %1269 = vrot.lane.b32.xlu2 %v1590_v30, %s1672_s0 }
0x173f   :  { %v1592_v33 = vpop.eup %1591 }
0x1740   :  { %v1247_v34 = vadd.f32 1.0, %v1592_v33  ;;  %v1505_v33 = vld [vmem:[%s1964_s4 + $0xe] ss:$0 sm:$0xff] }
0x1742   :  { %1593 = vrcp.f32 %v1247_v34  ;;  %v1259_v5 = vand.u32 2147483648, %v1247_v34  ;;  %vm1253_vm9 = vweird.f32 %v1247_v34  ;;  %v1257_v40 = vand.u32 2147483647, %v1247_v34 }
0x1744   :  { %v1260_v41 = vor.u32 1.1754944e-38, %v1259_v5  ;;  %vm1258_vm12 = vcmp.eq.f32.partialorder %v1257_v40, 8.507059e+37 }
0x1748   :  { %v1594_v35 = vpop.eup %1593 }
0x1749   :  { %v1249_v36 = vmul.f32 %v1594_v35, %v1247_v34  ;;  %vm1254_vm8 = vweird.f32 %v1594_v35 }
0x174a   :  { %vm1255_vm10 = vmor %vm1253_vm9, %vm1254_vm8 }
0x174b   :  { %v1250_v37 = vsub.f32 1.0, %v1249_v36 }
0x174d   :  { %v1251_v38 = vmul.f32 %v1594_v35, %v1250_v37  ;;  %v1506_v37 = vld [vmem:[%s1964_s4 + $0xf] ss:$0 sm:$0xff] }
0x174f   :  { %v1252_v39 = vadd.f32 %v1594_v35, %v1251_v38 }
0x1751   :  { %v1256_v47 = vsel %vm1255_vm10, %v1594_v35, %v1252_v39 }
0x1752   :  { %v1261_v43 = vsel %vm1258_vm12, %v1260_v41, %v1256_v47 }
0x1753   :  { %v1267_v44 = vmul.f32 %v1265_v11, %v1261_v43 }
0x1798   :  { %v1270_v42 = vpop.permute.xlu2 %1269 }
0x1799   :  { %v1272_v10 = vmul.f32 %v1270_v42, %v1261_v43 }
0x179b   :  { %1274 = vrot.lane.b32.xlu0 %v1272_v10, %s1672_s0 }
0x180d   :  { %v1275_v45 = vpop.permute.xlu0 %1274 }
0x180e   :  { %v1277_v46 = vadd.f32 %v1275_v45, %v1267_v44 }
0x1810   :  { %1595 = vtanh.f32 %v1277_v46  ;;  %v1335_v4 = vrot.slane %v1277_v46, 6 }
0x1816   :  { %v1596_v51 = vpop.eup %1595 }
0x1817   :  { %1280 = vrot.lane.b32.xlu1 %v1596_v51, %s1672_s0 }
0x1889   :  { %v1281_v12 = vpop.permute.xlu1 %1280 }
0x188a   :  { %v1283_v52 = vmul.f32 %v1281_v12, %v1261_v43 }
0x188c   :  { %v1285_v53 = vrot.slane %v1283_v52, 4 }
0x188e   :  { %1286 = vrot.lane.b32.xlu2 %v1285_v53, %s1671_s19 }
0x18e8   :  { %v1287_v54 = vpop.permute.xlu2 %1286 }
0x18e9   :  { %1461 = vmatmul.msk.f32.vlgmr.msra.gmra.mxu1 %vm111_vm3, %v1287_v54 }
0x1966   :  { %v1307_v55 = vpop.f32.mrf.mxu1 }
0x1967   :  { %v1311_v49 = vrot.slane %v1307_v55, 2 }
0x1969   :  { %v1313_v56 = vadd.f32 %v1311_v49, %v1886_v48 }
0x196b   :  { %1597 = vtanh.f32 %v1313_v56  ;;  %v1462_v58 = vmul.f32 -1.442695, %v1313_v56 }
0x196d   :  { %1599 = vpow2.f32 %v1462_v58 }
0x1971   :  { %v1598_v57 = vpop.eup %1597 }
0x1972   :  { %1339 = vrot.lane.b32.xlu0 %v1598_v57, %s1672_s0 }
0x1973   :  { %v1600_v59 = vpop.eup %1599 }
0x1974   :  { %v1317_v60 = vadd.f32 1.0, %v1600_v59 }
0x1976   :  { %1601 = vrcp.f32 %v1317_v60  ;;  %v1329_v2 = vand.u32 2147483648, %v1317_v60  ;;  %vm1323_vm14 = vweird.f32 %v1317_v60  ;;  %v1327_v3 = vand.u32 2147483647, %v1317_v60 }
0x1978   :  { %v1330_v7 = vor.u32 1.1754944e-38, %v1329_v2  ;;  %vm1328_vm1 = vcmp.eq.f32.partialorder %v1327_v3, 8.507059e+37 }
0x197a   :  { %1357 = vrot.lane.b32.xlu0 %v1502_v61, %s1671_s19 }
0x197c   :  { %v1602_v62 = vpop.eup %1601 }
0x197d   :  { %v1319_v63 = vmul.f32 %v1602_v62, %v1317_v60  ;;  %vm1324_vm13 = vweird.f32 %v1602_v62 }
0x197e   :  { %vm1325_vm15 = vmor %vm1323_vm14, %vm1324_vm13 }
0x197f   :  { %v1320_v0 = vsub.f32 1.0, %v1319_v63 }
0x1981   :  { %v1321_v1 = vmul.f32 %v1602_v62, %v1320_v0 }
0x1983   :  { %v1322_v48 = vadd.f32 %v1602_v62, %v1321_v1 }
0x1985   :  { %v1326_v6 = vsel %vm1325_vm15, %v1602_v62, %v1322_v48 }
0x1986   :  { %v1331_v15 = vsel %vm1328_vm1, %v1330_v7, %v1326_v6 }
0x1987   :  { %v1337_v20 = vmul.f32 %v1335_v4, %v1331_v15 }
0x19e4   :  { %v1340_v9 = vpop.permute.xlu0 %1339 }
0x19e5   :  { %v1342_v17 = vmul.f32 %v1340_v9, %v1331_v15 }
0x19e7   :  { %1344 = vrot.lane.b32.xlu1 %v1342_v17, %s1672_s0 }
0x19ec   :  { %v1358_v25 = vpop.permute.xlu0 %1357 }
0x19ef   :  { %1364 = vrot.lane.b32.xlu1 %v1503_v19, %s1671_s19 }
0x1a59   :  { %v1345_v21 = vpop.permute.xlu1 %1344 }
0x1a5a   :  { %v1347_v8 = vadd.f32 %v1345_v21, %v1337_v20 }
0x1a5c   :  { %1603 = vtanh.f32 %v1347_v8 }
0x1a61   :  { %v1365_v14 = vpop.permute.xlu1 %1364 }
0x1a62   :  { %v1604_v22 = vpop.eup %1603 }
0x1a63   :  { %1350 = vrot.lane.b32.xlu2 %v1604_v22, %s1672_s0 }
0x1abd   :  { %v1351_v50 = vpop.permute.xlu2 %1350 }
0x1abe   :  { %v1353_v26 = vmul.f32 %v1351_v50, %v1331_v15 }
0x1ac0   :  { %v1360_v27 = vmul.f32 %v1358_v25, %v1353_v26 }
0x1ac2   :  { %v1367_v28 = vadd.f32 %v1365_v14, %v1360_v27 }
0x1ac4   :  { %v1375_v16 = vrot.slane %v1367_v28, 6 }
0x1ac6   :  { %1376 = vrot.lane.b32.xlu2 %v1375_v16, %s1671_s19 }
0x1b20   :  { %v1377_v18 = vpop.permute.xlu2 %1376 }
0x1b21   :  { %1463 = vmatmul.msk.f32.vlgmr.msra.gmra.mxu2 %vm111_vm3, %v1377_v18  ;;  %vm1411_vm3 = vcmask 1024  }
0x1ba4   :  { %v1397_v30 = vpop.f32.mrf.mxu2 }
0x1ba5   :  { %v1398_v31 = vadd.f32 %v1504_v29, %v1397_v30 }
0x1ba7   :  { %v1400_v34 = vmax.f32 %v1398_v31, 0.0 }
0x1ba9   :  { %v1403_v35 = vmul.f32 %v1505_v33, %v1400_v34 }
0x1bab   :  { %v1405_v36 = vsel %vm1404_vm11, %v1403_v35, 0.0 }
0x1bac   :  { %1406 = vadd.xlane.f32.xlu0 %v1405_v36 }
0x1c1f   :  { %v1407_v38 = vpop.xlane.xlu0 %1406 }
0x1c20   :  { %v1410_v39 = vadd.f32 %v1506_v37, %v1407_v38 }
0x1c22   :  { %1412 = vst.msk [vmem:[%s1965_s5] sm:$0x3] %vm1411_vm3, %v1410_v39 }
0x1c23   :  { %1417 = vsyncpa [#allocation3], 1 }
0x1c24   :  { %1418 = vsyncpa [#allocation5], 1 }

</bundles_post_ra>
